<compile_context>
chip_gen: v7x
topology: tpu7x:2x2x1
jax: 0.10.0
libtpu: 0.0.40
codegen_flags: <defaults>
</compile_context>

<pallas_src>
import functools
from typing import NamedTuple

import jax
import jax.numpy as jnp
from jax.experimental import pallas as pl
from jax.experimental.pallas import tpu as pltpu

# ---- sizes ------------------------------------------------------------------
GENE_DIM = 500             # stands in for 273119 (kept small for the demo run)
F_IO = 3 * GENE_DIM        # flattened input/output feature dim (3 * 273119)
HIDDEN = [512, 256, 128, 64, 32]
BN_EPS = 1e-5
NEG_SLOPE = 0.1


def _round_up(x, m):
    return ((x + m - 1) // m) * m


def _cdiv(a, b):
    return -(-a // b)


# ---- per-generation configuration ------------------------------------------
class HWConfig(NamedTuple):
    weight_tile_bytes: int   # target bf16 weight-tile size (the critical stream)
    tn_max: int              # hard cap on the lane (output) tile
    out_tile_bytes: int      # cap on the resident f32 (M, tn) output block
    buffer_count: int        # pipeline depth for the weight stream
    min_n_tiles: int         # force >= this many N tiles (megacore sharding)
    vmem_limit_bytes: int    # scoped VMEM limit handed to Mosaic


def default_hw_config() -> HWConfig:
    """Pick tile/pipeline parameters from the attached TPU generation."""
    kind = ""
    try:
        kind = jax.devices()[0].device_kind.lower()
    except Exception:  # pragma: no cover - be robust on exotic runtimes
        pass
    if "v7" in kind:
        # 64 MiB VMEM per TC, 2 TCs: tighter tiles, shallower pipeline, split N.
        return HWConfig(weight_tile_bytes=6 << 20, tn_max=64 * 1024,
                        out_tile_bytes=4 << 20, buffer_count=2,
                        min_n_tiles=2, vmem_limit_bytes=48 << 20)
    if "v6" in kind:
        # 128 MiB VMEM: large tiles amortize the ~0.35 us/step overhead.
        return HWConfig(weight_tile_bytes=16 << 20, tn_max=128 * 1024,
                        out_tile_bytes=8 << 20, buffer_count=3,
                        min_n_tiles=1, vmem_limit_bytes=100 << 20)
    if "v5" in kind:
        # Purely DMA-bound on v5e: big tiles, Buffered(2) is enough.
        return HWConfig(weight_tile_bytes=16 << 20, tn_max=128 * 1024,
                        out_tile_bytes=8 << 20, buffer_count=2,
                        min_n_tiles=1, vmem_limit_bytes=100 << 20)
    # Conservative fallback (also fine under interpret mode / unknown parts).
    return HWConfig(weight_tile_bytes=4 << 20, tn_max=32 * 1024,
                    out_tile_bytes=4 << 20, buffer_count=2,
                    min_n_tiles=1, vmem_limit_bytes=40 << 20)


def _pick_tiles(K, N, M, cfg: HWConfig):
    """Pick (tk, tn) so the bf16 weight tile ~= cfg.weight_tile_bytes.

    Budget-driven in both dims: when K is small (layer 6) tn grows until the
    weight tile hits the budget; when N is small (layer 1) tk grows instead.
    tn is also capped so the resident f32 output block stays modest, then both
    tiles are shrunk to the smallest 128-aligned size that keeps the same block
    count (minimizes streamed padding).  min_n_tiles forces an N split so the
    "parallel" axis can be sharded across TensorCores (v7x megacore).
    """
    wb = cfg.weight_tile_bytes

    # --- N (lane / output) tile ---------------------------------------------
    k_slab = max(1, min(K, 128))
    tn = (wb // (2 * k_slab)) // 128 * 128            # budget-driven width
    tn = max(128, min(tn, cfg.tn_max))
    out_cap = max(128, (cfg.out_tile_bytes // (4 * max(M, 1))) // 128 * 128)
    tn = min(tn, out_cap)                             # bound the (M, tn) f32 block
    tn = min(tn, _round_up(N, 128))
    if N <= tn:
        tn = N                                        # full dim (legal even if not 128-aligned)
    if cfg.min_n_tiles > 1 and N > 128:
        tn = min(tn, _round_up(_cdiv(N, cfg.min_n_tiles), 128))
    if N > tn:                                        # shrink: same block count, less padding
        n_blocks = _cdiv(N, tn)
        tn = _round_up(_cdiv(N, n_blocks), 128)

    # --- K (reduction) tile ---------------------------------------------------
    tk = max(128, (wb // (2 * tn)) // 128 * 128)
    if K <= tk:
        tk = K                                        # full dim
    else:
        k_blocks = _cdiv(K, tk)
        tk = _round_up(_cdiv(K, k_blocks), 128)       # shrink to minimize padding
    return tk, tn


# ---- generic tiled  (x @ w + affine) -> LeakyReLU  kernel -------------------
def _matmul_affine_lrelu_kernel(x_ref, w_ref, a_ref, o_ref):
    k = pl.program_id(1)

    @pl.when(k == 0)
    def _():
        o_ref[...] = jnp.zeros_like(o_ref)

    # Cast the activation block in-kernel (saves an HBM round trip in the
    # wrapper); no-op when the input is already bf16 (layer 6).
    x_blk = x_ref[...].astype(jnp.bfloat16)
    o_ref[...] += jnp.dot(x_blk, w_ref[...], preferred_element_type=jnp.float32)

    @pl.when(k == pl.num_programs(1) - 1)
    def _():
        y = o_ref[...] + a_ref[...]                   # folded Linear bias + BN affine
        o_ref[...] = jnp.maximum(y, NEG_SLOPE * y)    # LeakyReLU(0.1)


def tiled_linear_affine_lrelu(x, w, affine, *, n_valid, tk, tn,
                              buffer_count, vmem_limit):
    """y = leaky_relu(x @ w + affine) for a PRE-PADDED weight/affine pair.

    x: (M, K) f32 or bf16 (K may be < w.shape[0]; the small activation is
    zero-padded here).  w: (Kp, Np) bf16, affine: (1, Np) f32 — both padded
    offline in prepare_params so no weight copy happens inside jit.  Padded
    weight rows are zero (padded activation columns contribute nothing) and
    padded output columns are sliced off."""
    M, K = x.shape
    Kp, Np = w.shape
    assert Kp % tk == 0 and Np % tn == 0
    if Kp != K:                                       # tiny activation-only pad
        x = jnp.pad(x, ((0, 0), (0, Kp - K)))

    grid = (Np // tn, Kp // tk)                       # N outer (parallel), K inner

    out = pl.pallas_call(
        _matmul_affine_lrelu_kernel,
        out_shape=jax.ShapeDtypeStruct((M, Np), jnp.float32),
        grid_spec=pltpu.PrefetchScalarGridSpec(
            num_scalar_prefetch=0,
            grid=grid,
            in_specs=[
                pl.BlockSpec((M, tk), lambda n, k: (0, k)),
                # Weight stream is the critical path: multi-buffer it.
                pl.BlockSpec((tk, tn), lambda n, k: (k, n),
                             pipeline_mode=pl.Buffered(buffer_count)),
                pl.BlockSpec((1, tn), lambda n, k: (0, n)),
            ],
            out_specs=pl.BlockSpec((M, tn), lambda n, k: (0, n)),
        ),
        compiler_params=pltpu.CompilerParams(
            dimension_semantics=("parallel", "arbitrary"),
            vmem_limit_bytes=vmem_limit,
        ),
    )(x, w, affine)
    return out[:, :n_valid] if Np != n_valid else out


# ---- fused small middle layers (512 -> 256 -> 128 -> 64 -> 32) --------------
def _mid_mlp_kernel(x_ref, w2_ref, a2_ref, w3_ref, a3_ref,
                    w4_ref, a4_ref, w5_ref, a5_ref, o_ref):
    h = x_ref[...].astype(jnp.bfloat16)
    for w_ref, a_ref in ((w2_ref, a2_ref), (w3_ref, a3_ref),
                         (w4_ref, a4_ref), (w5_ref, a5_ref)):
        y = jnp.dot(h, w_ref[...], preferred_element_type=jnp.float32)
        y = y + a_ref[...]
        y = jnp.maximum(y, NEG_SLOPE * y)
        h = y.astype(jnp.bfloat16)
    o_ref[...] = h                                    # bf16 out: layer 6 reads it directly


def fused_mid_mlp(h, mid_params):
    """Four tiny Linear+BN+LeakyReLU layers in one launch; all weights
    (~340 KB bf16) and activations explicitly VMEM-resident."""
    M = h.shape[0]
    n_out = mid_params[-1][0].shape[1]
    args = [h]
    for w, a in mid_params:
        args.extend([w, a])
    vmem = lambda: pl.BlockSpec(memory_space=pltpu.MemorySpace.VMEM)
    return pl.pallas_call(
        _mid_mlp_kernel,
        out_shape=jax.ShapeDtypeStruct((M, n_out), jnp.bfloat16),
        in_specs=[vmem() for _ in args],
        out_specs=vmem(),
    )(*args)


# ---- parameter construction (mirrors nn.Module __init__, eval mode) ---------
def init_params(key):
    dims = [F_IO] + HIDDEN + [F_IO]
    raw = []
    for i in range(len(dims) - 1):
        fan_in, fan_out = dims[i], dims[i + 1]
        key, kw, kb = jax.random.split(key, 3)
        bound = fan_in ** -0.5
        # Linear weight stored as (in, out) so the kernel does x @ W directly.
        w = jax.random.uniform(kw, (fan_in, fan_out), jnp.float32, -bound, bound)
        b = jax.random.uniform(kb, (fan_out,), jnp.float32, -bound, bound)
        gamma = jnp.ones((fan_out,), jnp.float32)           # BN at init (eval)
        beta = jnp.zeros((fan_out,), jnp.float32)
        running_mean = jnp.zeros((fan_out,), jnp.float32)
        running_var = jnp.ones((fan_out,), jnp.float32)
        raw.append((w, b, gamma, beta, running_mean, running_var))
    return raw


def _fold_bn(w, b, gamma, beta, mean, var):
    """Fold eval-mode BatchNorm into a Linear; weight to bf16, affine f32."""
    scale = gamma / jnp.sqrt(var + BN_EPS)
    shift = beta - mean * scale
    w_folded = (w * scale[None, :]).astype(jnp.bfloat16)
    affine = (b * scale + shift).reshape(1, -1).astype(jnp.float32)
    return w_folded, affine


def prepare_params(raw, cfg: HWConfig, max_batch=8):
    """Fold BN, pick tiles and pre-pad the two big weight streams ONCE.

    Returns (params pytree, static meta).  meta is a hashable tuple of ints so
    the jitted forward can build grids/BlockSpecs from it without retracing the
    huge weights or re-padding them in HBM every call."""
    Mp = _round_up(max(max_batch, 1), 8)
    folded = [_fold_bn(*layer) for layer in raw]

    def pad_big(w, a):
        K, N = w.shape
        tk, tn = _pick_tiles(K, N, Mp, cfg)
        Kp, Np = _round_up(K, tk), _round_up(N, tn)
        if (Kp, Np) != (K, N):
            w = jnp.pad(w, ((0, Kp - K), (0, Np - N)))
        if Np != N:
            a = jnp.pad(a, ((0, 0), (0, Np - N)))
        return (w, a), (K, N, tk, tn)

    (w1, a1), meta1 = pad_big(*folded[0])
    (w6, a6), meta6 = pad_big(*folded[5])
    params = {"big1": (w1, a1), "mid": tuple(folded[1:5]), "big6": (w6, a6)}
    meta = (meta1, meta6, int(cfg.buffer_count), int(cfg.vmem_limit_bytes))
    return params, meta


# ---- full model forward ------------------------------------------------------
@functools.partial(jax.jit, static_argnames=("meta",))
def linear_model_forward(x, params, meta):
    (K1, N1, tk1, tn1), (K6, N6, tk6, tn6), buffer_count, vmem_limit = meta
    w1, a1 = params["big1"]
    w6, a6 = params["big6"]

    h = x.reshape(-1, K1)                      # matches x.view(-1, 3*273119)
    B = h.shape[0]
    # bf16 packs 16 rows/vreg; at B=2 an 8-row pad is negligible and keeps the
    # f32 layer-1 activation stream minimal.
    Mp = _round_up(max(B, 1), 8)
    if Mp != B:
        h = jnp.pad(h, ((0, Mp - B), (0, 0)))

    # Layer 1: huge-K GEMM (K-tiled, weight-streamed; N split on 2-TC parts).
    h = tiled_linear_affine_lrelu(h, w1, a1, n_valid=N1, tk=tk1, tn=tn1,
                                  buffer_count=buffer_count,
                                  vmem_limit=vmem_limit)
    # Layers 2-5: fused, fully VMEM-resident, bf16 output.
    h = fused_mid_mlp(h, params["mid"])
    # Layer 6: huge-N GEMM (budget-sized N tiles, weight-streamed).
    h = tiled_linear_affine_lrelu(h, w6, a6, n_valid=N6, tk=tk6, tn=tn6,
                                  buffer_count=buffer_count,
                                  vmem_limit=vmem_limit)
    # Dropout (p=0.1) is identity in eval mode.
    return h[:B].reshape(-1, 3, GENE_DIM)


def reference_forward(x, folded):
    """Pure-JAX reference using the same folded bf16 weights / f32 accumulation."""
    h = x.reshape(-1, F_IO)
    for (w, a) in folded:
        y = jnp.dot(h.astype(jnp.bfloat16), w,
                    preferred_element_type=jnp.float32) + a
        h = jnp.maximum(y, NEG_SLOPE * y)
    return h.reshape(-1, 3, GENE_DIM)


if __name__ == "__main__":
    key = jax.random.PRNGKey(0)
    kx, kp = jax.random.split(key)

    B = 2
    x = jax.random.normal(kx, (B, 3, GENE_DIM), dtype=jnp.float32)
    raw = init_params(kp)

    # Toy config: tiny weight-tile budget + forced N split so this small run
    # exercises the multi-step K accumulation, N tiling, offline padding and
    # megacore N-split paths that the real 3*273119-wide layers need.  For the
    # production model just use default_hw_config() unmodified.
    cfg = default_hw_config()._replace(
        weight_tile_bytes=128 * 1024, tn_max=512, out_tile_bytes=1 << 20,
        buffer_count=2, min_n_tiles=2, vmem_limit_bytes=32 << 20)

    params, meta = prepare_params(raw, cfg, max_batch=B)

    out = linear_model_forward(x, params, meta=meta)
    out = jax.block_until_ready(out)
    assert out.shape == (B, 3, GENE_DIM), out.shape

    folded = [_fold_bn(*layer) for layer in raw]
    ref = reference_forward(x, folded)
    max_err = float(jnp.max(jnp.abs(out - ref)))
    assert jnp.allclose(out, ref, atol=3e-3, rtol=3e-3), max_err

    print("KERNEL_OK")
</pallas_src>

<mosaic_0001>
module attributes {stable_mosaic.version = 11 : i64} {
  func.func @_matmul_affine_lrelu_kernel(%arg0: i32, %arg1: i32, %arg2: memref<8x256xf32, #tpu.memory_space<vmem>>, %arg3: memref<256x256xbf16, #tpu.memory_space<vmem>>, %arg4: memref<1x256xf32, #tpu.memory_space<vmem>>, %arg5: memref<8x256xf32, #tpu.memory_space<vmem>>) attributes {dimension_semantics = [#tpu.dimension_semantics<parallel>, #tpu.dimension_semantics<arbitrary>], iteration_bounds = array<i64: 2, 6>, scalar_prefetch = 0 : i64, scratch_operands = 0 : i64, tpu.core_type = #tpu.core_type<tc>, window_params = [{transform_indices = @transform_0, window_bounds = array<i64: 8, 256>}, {pipeline_mode = #tpu.pipeline_mode<double_buffered>, transform_indices = @transform_1, window_bounds = array<i64: 256, 256>}, {transform_indices = @transform_2, window_bounds = array<i64: 1, 256>}, {transform_indices = @transform_3, window_bounds = array<i64: 8, 256>}]} {
    %c0_i32 = arith.constant 0 : i32
    %0 = arith.cmpi eq, %arg1, %c0_i32 : i32
    %1 = arith.extui %0 : i1 to i32
    %c0_i32_0 = arith.constant 0 : i32
    %2 = arith.cmpi ne, %1, %c0_i32_0 : i32
    scf.if %2 {
      %cst_9 = arith.constant 0.000000e+00 : f32
      %13 = vector.broadcast %cst_9 : f32 to vector<8x256xf32>
      %c0_10 = arith.constant 0 : index
      %c0_11 = arith.constant 0 : index
      %14 = vector.load %arg5[%c0_10, %c0_11] : memref<8x256xf32, #tpu.memory_space<vmem>>, vector<8x256xf32>
      tpu.vector_store %arg5[%c0_10, %c0_11], %13 {strides = array<i32>} : memref<8x256xf32, #tpu.memory_space<vmem>>, vector<8x256xf32>,
    } else {
    }
    %c0 = arith.constant 0 : index
    %c0_1 = arith.constant 0 : index
    %3 = vector.load %arg2[%c0, %c0_1] : memref<8x256xf32, #tpu.memory_space<vmem>>, vector<8x256xf32>
    %4 = arith.truncf %3 : vector<8x256xf32> to vector<8x256xbf16>
    %c0_2 = arith.constant 0 : index
    %c0_3 = arith.constant 0 : index
    %5 = vector.load %arg5[%c0_2, %c0_3] : memref<8x256xf32, #tpu.memory_space<vmem>>, vector<8x256xf32>
    %c0_4 = arith.constant 0 : index
    %c0_5 = arith.constant 0 : index
    %6 = vector.load %arg3[%c0_4, %c0_5] : memref<256x256xbf16, #tpu.memory_space<vmem>>, vector<256x256xbf16>
    %cst = arith.constant dense<0.000000e+00> : vector<8x256xf32>
    %7 = tpu.matmul %4, %6, %cst {dimension_numbers = #tpu.dot_dimension_numbers<[1], [0], [0], [1], [0, 0, 1, 1], [], []>} : vector<8x256xbf16>, vector<256x256xbf16>, vector<8x256xf32> -> vector<8x256xf32>
    %8 = arith.addf %5, %7 : vector<8x256xf32>
    %c0_6 = arith.constant 0 : index
    %c0_7 = arith.constant 0 : index
    %9 = vector.load %arg5[%c0_6, %c0_7] : memref<8x256xf32, #tpu.memory_space<vmem>>, vector<8x256xf32>
    tpu.vector_store %arg5[%c0_6, %c0_7], %8 {strides = array<i32>} : memref<8x256xf32, #tpu.memory_space<vmem>>, vector<8x256xf32>,
    %c5_i32 = arith.constant 5 : i32
    %10 = arith.cmpi eq, %arg1, %c5_i32 : i32
    %11 = arith.extui %10 : i1 to i32
    %c0_i32_8 = arith.constant 0 : i32
    %12 = arith.cmpi ne, %11, %c0_i32_8 : i32
    scf.if %12 {
      %c0_9 = arith.constant 0 : index
      %c0_10 = arith.constant 0 : index
      %13 = vector.load %arg5[%c0_9, %c0_10] : memref<8x256xf32, #tpu.memory_space<vmem>>, vector<8x256xf32>
      %c0_11 = arith.constant 0 : index
      %c0_12 = arith.constant 0 : index
      %14 = vector.load %arg4[%c0_11, %c0_12] : memref<1x256xf32, #tpu.memory_space<vmem>>, vector<1x256xf32>
      %15 = vector.broadcast %14 : vector<1x256xf32> to vector<8x256xf32>
      %16 = arith.addf %13, %15 : vector<8x256xf32>
      %cst_13 = arith.constant 1.000000e-01 : f32
      %17 = vector.broadcast %cst_13 : f32 to vector<8x256xf32>
      %18 = arith.mulf %17, %16 : vector<8x256xf32>
      %19 = arith.maximumf %16, %18 : vector<8x256xf32>
      %c0_14 = arith.constant 0 : index
      %c0_15 = arith.constant 0 : index
      %20 = vector.load %arg5[%c0_14, %c0_15] : memref<8x256xf32, #tpu.memory_space<vmem>>, vector<8x256xf32>
      tpu.vector_store %arg5[%c0_14, %c0_15], %19 {strides = array<i32>} : memref<8x256xf32, #tpu.memory_space<vmem>>, vector<8x256xf32>,
    } else {
    }
    return
  }
  func.func @transform_0(%arg0: i32, %arg1: i32) -> (i32, i32) {
    %c0_i32 = arith.constant 0 : i32
    %c0_i32_0 = arith.constant 0 : i32
    return %c0_i32, %arg1 : i32, i32
  }
  func.func @transform_1(%arg0: i32, %arg1: i32) -> (i32, i32) {
    %c0_i32 = arith.constant 0 : i32
    return %arg1, %arg0 : i32, i32
  }
  func.func @transform_2(%arg0: i32, %arg1: i32) -> (i32, i32) {
    %c0_i32 = arith.constant 0 : i32
    %c0_i32_0 = arith.constant 0 : i32
    return %c0_i32, %arg0 : i32, i32
  }
  func.func @transform_3(%arg0: i32, %arg1: i32) -> (i32, i32) {
    %c0_i32 = arith.constant 0 : i32
    %c0_i32_0 = arith.constant 0 : i32
    return %c0_i32, %arg0 : i32, i32
  }
}

module attributes {stable_mosaic.version = 11 : i64} {
  func.func @_mid_mlp_kernel(%arg0: memref<8x512xf32, #tpu.memory_space<vmem>>, %arg1: memref<512x256xbf16, #tpu.memory_space<vmem>>, %arg2: memref<1x256xf32, #tpu.memory_space<vmem>>, %arg3: memref<256x128xbf16, #tpu.memory_space<vmem>>, %arg4: memref<1x128xf32, #tpu.memory_space<vmem>>, %arg5: memref<128x64xbf16, #tpu.memory_space<vmem>>, %arg6: memref<1x64xf32, #tpu.memory_space<vmem>>, %arg7: memref<64x32xbf16, #tpu.memory_space<vmem>>, %arg8: memref<1x32xf32, #tpu.memory_space<vmem>>, %arg9: memref<8x32xbf16, #tpu.memory_space<vmem>>) attributes {dimension_semantics = [], scalar_prefetch = 0 : i64, scratch_operands = 0 : i64, tpu.core_type = #tpu.core_type<tc>} {
    %c0 = arith.constant 0 : index
    %c0_0 = arith.constant 0 : index
    %0 = vector.load %arg0[%c0, %c0_0] : memref<8x512xf32, #tpu.memory_space<vmem>>, vector<8x512xf32>
    %1 = arith.truncf %0 : vector<8x512xf32> to vector<8x512xbf16>
    %c0_1 = arith.constant 0 : index
    %c0_2 = arith.constant 0 : index
    %2 = vector.load %arg1[%c0_1, %c0_2] : memref<512x256xbf16, #tpu.memory_space<vmem>>, vector<512x256xbf16>
    %cst = arith.constant dense<0.000000e+00> : vector<8x256xf32>
    %3 = tpu.matmul %1, %2, %cst {dimension_numbers = #tpu.dot_dimension_numbers<[1], [0], [0], [1], [0, 0, 1, 1], [], []>} : vector<8x512xbf16>, vector<512x256xbf16>, vector<8x256xf32> -> vector<8x256xf32>
    %c0_3 = arith.constant 0 : index
    %c0_4 = arith.constant 0 : index
    %4 = vector.load %arg2[%c0_3, %c0_4] : memref<1x256xf32, #tpu.memory_space<vmem>>, vector<1x256xf32>
    %5 = vector.broadcast %4 : vector<1x256xf32> to vector<8x256xf32>
    %6 = arith.addf %3, %5 : vector<8x256xf32>
    %cst_5 = arith.constant 1.000000e-01 : f32
    %7 = vector.broadcast %cst_5 : f32 to vector<8x256xf32>
    %8 = arith.mulf %7, %6 : vector<8x256xf32>
    %9 = arith.maximumf %6, %8 : vector<8x256xf32>
    %10 = arith.truncf %9 : vector<8x256xf32> to vector<8x256xbf16>
    %c0_6 = arith.constant 0 : index
    %c0_7 = arith.constant 0 : index
    %11 = vector.load %arg3[%c0_6, %c0_7] : memref<256x128xbf16, #tpu.memory_space<vmem>>, vector<256x128xbf16>
    %cst_8 = arith.constant dense<0.000000e+00> : vector<8x128xf32>
    %12 = tpu.matmul %10, %11, %cst_8 {dimension_numbers = #tpu.dot_dimension_numbers<[1], [0], [0], [1], [0, 0, 1, 1], [], []>} : vector<8x256xbf16>, vector<256x128xbf16>, vector<8x128xf32> -> vector<8x128xf32>
    %c0_9 = arith.constant 0 : index
    %c0_10 = arith.constant 0 : index
    %13 = vector.load %arg4[%c0_9, %c0_10] : memref<1x128xf32, #tpu.memory_space<vmem>>, vector<1x128xf32>
    %14 = vector.broadcast %13 : vector<1x128xf32> to vector<8x128xf32>
    %15 = arith.addf %12, %14 : vector<8x128xf32>
    %cst_11 = arith.constant 1.000000e-01 : f32
    %16 = vector.broadcast %cst_11 : f32 to vector<8x128xf32>
    %17 = arith.mulf %16, %15 : vector<8x128xf32>
    %18 = arith.maximumf %15, %17 : vector<8x128xf32>
    %19 = arith.truncf %18 : vector<8x128xf32> to vector<8x128xbf16>
    %c0_12 = arith.constant 0 : index
    %c0_13 = arith.constant 0 : index
    %20 = vector.load %arg5[%c0_12, %c0_13] : memref<128x64xbf16, #tpu.memory_space<vmem>>, vector<128x64xbf16>
    %cst_14 = arith.constant dense<0.000000e+00> : vector<8x64xf32>
    %21 = tpu.matmul %19, %20, %cst_14 {dimension_numbers = #tpu.dot_dimension_numbers<[1], [0], [0], [1], [0, 0, 1, 1], [], []>} : vector<8x128xbf16>, vector<128x64xbf16>, vector<8x64xf32> -> vector<8x64xf32>
    %c0_15 = arith.constant 0 : index
    %c0_16 = arith.constant 0 : index
    %22 = vector.load %arg6[%c0_15, %c0_16] : memref<1x64xf32, #tpu.memory_space<vmem>>, vector<1x64xf32>
    %23 = vector.broadcast %22 : vector<1x64xf32> to vector<8x64xf32>
    %24 = arith.addf %21, %23 : vector<8x64xf32>
    %cst_17 = arith.constant 1.000000e-01 : f32
    %25 = vector.broadcast %cst_17 : f32 to vector<8x64xf32>
    %26 = arith.mulf %25, %24 : vector<8x64xf32>
    %27 = arith.maximumf %24, %26 : vector<8x64xf32>
    %28 = arith.truncf %27 : vector<8x64xf32> to vector<8x64xbf16>
    %c0_18 = arith.constant 0 : index
    %c0_19 = arith.constant 0 : index
    %29 = vector.load %arg7[%c0_18, %c0_19] : memref<64x32xbf16, #tpu.memory_space<vmem>>, vector<64x32xbf16>
    %cst_20 = arith.constant dense<0.000000e+00> : vector<8x32xf32>
    %30 = tpu.matmul %28, %29, %cst_20 {dimension_numbers = #tpu.dot_dimension_numbers<[1], [0], [0], [1], [0, 0, 1, 1], [], []>} : vector<8x64xbf16>, vector<64x32xbf16>, vector<8x32xf32> -> vector<8x32xf32>
    %c0_21 = arith.constant 0 : index
    %c0_22 = arith.constant 0 : index
    %31 = vector.load %arg8[%c0_21, %c0_22] : memref<1x32xf32, #tpu.memory_space<vmem>>, vector<1x32xf32>
    %32 = vector.broadcast %31 : vector<1x32xf32> to vector<8x32xf32>
    %33 = arith.addf %30, %32 : vector<8x32xf32>
    %cst_23 = arith.constant 1.000000e-01 : f32
    %34 = vector.broadcast %cst_23 : f32 to vector<8x32xf32>
    %35 = arith.mulf %34, %33 : vector<8x32xf32>
    %36 = arith.maximumf %33, %35 : vector<8x32xf32>
    %37 = arith.truncf %36 : vector<8x32xf32> to vector<8x32xbf16>
    %c0_24 = arith.constant 0 : index
    %c0_25 = arith.constant 0 : index
    %38 = vector.load %arg9[%c0_24, %c0_25] : memref<8x32xbf16, #tpu.memory_space<vmem>>, vector<8x32xbf16>
    tpu.vector_store %arg9[%c0_24, %c0_25], %37 {strides = array<i32>} : memref<8x32xbf16, #tpu.memory_space<vmem>>, vector<8x32xbf16>,
    return
  }
}

module attributes {stable_mosaic.version = 11 : i64} {
  func.func @_matmul_affine_lrelu_kernel(%arg0: i32, %arg1: i32, %arg2: memref<8x32xbf16, #tpu.memory_space<vmem>>, %arg3: memref<32x512xbf16, #tpu.memory_space<vmem>>, %arg4: memref<1x512xf32, #tpu.memory_space<vmem>>, %arg5: memref<8x512xf32, #tpu.memory_space<vmem>>) attributes {dimension_semantics = [#tpu.dimension_semantics<parallel>, #tpu.dimension_semantics<arbitrary>], iteration_bounds = array<i64: 3, 1>, scalar_prefetch = 0 : i64, scratch_operands = 0 : i64, tpu.core_type = #tpu.core_type<tc>, window_params = [{transform_indices = @transform_0, window_bounds = array<i64: 8, 32>}, {pipeline_mode = #tpu.pipeline_mode<double_buffered>, transform_indices = @transform_1, window_bounds = array<i64: 32, 512>}, {transform_indices = @transform_2, window_bounds = array<i64: 1, 512>}, {transform_indices = @transform_3, window_bounds = array<i64: 8, 512>}]} {
    %c0_i32 = arith.constant 0 : i32
    %0 = arith.cmpi eq, %arg1, %c0_i32 : i32
    %1 = arith.extui %0 : i1 to i32
    %c0_i32_0 = arith.constant 0 : i32
    %2 = arith.cmpi ne, %1, %c0_i32_0 : i32
    scf.if %2 {
      %cst_10 = arith.constant 0.000000e+00 : f32
      %12 = vector.broadcast %cst_10 : f32 to vector<8x512xf32>
      %c0_11 = arith.constant 0 : index
      %c0_12 = arith.constant 0 : index
      %13 = vector.load %arg5[%c0_11, %c0_12] : memref<8x512xf32, #tpu.memory_space<vmem>>, vector<8x512xf32>
      tpu.vector_store %arg5[%c0_11, %c0_12], %12 {strides = array<i32>} : memref<8x512xf32, #tpu.memory_space<vmem>>, vector<8x512xf32>,
    } else {
    }
    %c0 = arith.constant 0 : index
    %c0_1 = arith.constant 0 : index
    %3 = vector.load %arg2[%c0, %c0_1] : memref<8x32xbf16, #tpu.memory_space<vmem>>, vector<8x32xbf16>
    %c0_2 = arith.constant 0 : index
    %c0_3 = arith.constant 0 : index
    %4 = vector.load %arg5[%c0_2, %c0_3] : memref<8x512xf32, #tpu.memory_space<vmem>>, vector<8x512xf32>
    %c0_4 = arith.constant 0 : index
    %c0_5 = arith.constant 0 : index
    %5 = vector.load %arg3[%c0_4, %c0_5] : memref<32x512xbf16, #tpu.memory_space<vmem>>, vector<32x512xbf16>
    %cst = arith.constant dense<0.000000e+00> : vector<8x512xf32>
    %6 = tpu.matmul %3, %5, %cst {dimension_numbers = #tpu.dot_dimension_numbers<[1], [0], [0], [1], [0, 0, 1, 1], [], []>} : vector<8x32xbf16>, vector<32x512xbf16>, vector<8x512xf32> -> vector<8x512xf32>
    %7 = arith.addf %4, %6 : vector<8x512xf32>
    %c0_6 = arith.constant 0 : index
    %c0_7 = arith.constant 0 : index
    %8 = vector.load %arg5[%c0_6, %c0_7] : memref<8x512xf32, #tpu.memory_space<vmem>>, vector<8x512xf32>
    tpu.vector_store %arg5[%c0_6, %c0_7], %7 {strides = array<i32>} : memref<8x512xf32, #tpu.memory_space<vmem>>, vector<8x512xf32>,
    %c0_i32_8 = arith.constant 0 : i32
    %9 = arith.cmpi eq, %arg1, %c0_i32_8 : i32
    %10 = arith.extui %9 : i1 to i32
    %c0_i32_9 = arith.constant 0 : i32
    %11 = arith.cmpi ne, %10, %c0_i32_9 : i32
    scf.if %11 {
      %c0_10 = arith.constant 0 : index
      %c0_11 = arith.constant 0 : index
      %12 = vector.load %arg5[%c0_10, %c0_11] : memref<8x512xf32, #tpu.memory_space<vmem>>, vector<8x512xf32>
      %c0_12 = arith.constant 0 : index
      %c0_13 = arith.constant 0 : index
      %13 = vector.load %arg4[%c0_12, %c0_13] : memref<1x512xf32, #tpu.memory_space<vmem>>, vector<1x512xf32>
      %14 = vector.broadcast %13 : vector<1x512xf32> to vector<8x512xf32>
      %15 = arith.addf %12, %14 : vector<8x512xf32>
      %cst_14 = arith.constant 1.000000e-01 : f32
      %16 = vector.broadcast %cst_14 : f32 to vector<8x512xf32>
      %17 = arith.mulf %16, %15 : vector<8x512xf32>
      %18 = arith.maximumf %15, %17 : vector<8x512xf32>
      %c0_15 = arith.constant 0 : index
      %c0_16 = arith.constant 0 : index
      %19 = vector.load %arg5[%c0_15, %c0_16] : memref<8x512xf32, #tpu.memory_space<vmem>>, vector<8x512xf32>
      tpu.vector_store %arg5[%c0_15, %c0_16], %18 {strides = array<i32>} : memref<8x512xf32, #tpu.memory_space<vmem>>, vector<8x512xf32>,
    } else {
    }
    return
  }
  func.func @transform_0(%arg0: i32, %arg1: i32) -> (i32, i32) {
    %c0_i32 = arith.constant 0 : i32
    %c0_i32_0 = arith.constant 0 : i32
    return %c0_i32, %arg1 : i32, i32
  }
  func.func @transform_1(%arg0: i32, %arg1: i32) -> (i32, i32) {
    %c0_i32 = arith.constant 0 : i32
    return %arg1, %arg0 : i32, i32
  }
  func.func @transform_2(%arg0: i32, %arg1: i32) -> (i32, i32) {
    %c0_i32 = arith.constant 0 : i32
    %c0_i32_0 = arith.constant 0 : i32
    return %c0_i32, %arg0 : i32, i32
  }
  func.func @transform_3(%arg0: i32, %arg1: i32) -> (i32, i32) {
    %c0_i32 = arith.constant 0 : i32
    %c0_i32_0 = arith.constant 0 : i32
    return %c0_i32, %arg0 : i32, i32
  }
}

</mosaic_0001>

<bundles_post_ra>
// kernel: linear_model_forward.3
= control target key start
LH: loop header
LB: loop body
LE: loop exit
PB: predicated region body
PF: predicated region fallthrough
CT: control target
= control target key end

     0   :  { %s1381_s0 = inlined_call_operand.vmem [shape: f32[8,1536], index: 0, kind: input, shape index: {}]   ;;  %s1382_s1 = inlined_call_operand.hbm [shape: bf16[1536,512], index: 1, kind: input, shape index: {}]   ;;  %s1383_s2 = inlined_call_operand.hbm [shape: f32[1,512], index: 2, kind: input, shape index: {}]   ;;  %s1384_s3 = inlined_call_operand.vmem [shape: f32[8,512], index: 3, kind: output, shape index: {}]  }
   0x1   :  { %1390 = sst [smem:[#allocation9_spill]] %s1382_s1 }
   0x2   :  { %8 = vsyncpa [#allocation3], 0 }
   0x3   :  { %10 = vsyncpa [#allocation3 + $0x1], 0 }
   0x4   :  { %11 = vsyncpa [#allocation5], 0 }
   0x5   :  { %13 = vsyncpa [#allocation5 + $0x1], 0  ;;  %s1055_s12 = smov 0   ;;  %s1057_s13 = smov 0  }
   0x6   :  { %s1059_s14 = smov 0   ;;  %s1061_s15 = smov 0  }
   0x7   :  { %s1063_s16 = smov 0   ;;  %s1065_s17 = smov 0  }
   0x8   :  { %s1067_s18 = smov 0   ;;  %s1069_s19 = smov 0  }
   0x9   :  { %s1071_s20 = smov 0   ;;  %s1073_s21 = smov 0  }
   0xa   :  { %s1075_s22 = smov 0  }
   0xb LB: > { %s28_s23 = sadd.s32 1, %s1019_s20  ;;  %s66_s24 = sadd.s32 1, %s1007_s17  ;;  %s1027_s22 = sphi %s1075_s22, %s19_s22   ;;  %s1023_s21 = sphi %s1073_s21, %s1416_s21   ;;  %s1019_s20 = sphi %s1071_s20, %s1415_s20   ;;  %s1015_s19 = sphi %s1069_s19, %s1414_s19   ;;  %s1011_s18 = sphi %s1067_s18, %s1413_s18   ;;  %s1007_s17 = sphi %s1065_s17, %s1412_s17   ;;  %s1003_s16 = sphi %s1063_s16, %s1411_s16   ;;  %s999_s15 = sphi %s1061_s15, %s1410_s15   ;;  %s995_s14 = sphi %s1059_s14, %s1409_s14   ;;  %s991_s13 = sphi %s1057_s13, %s1408_s13   ;;  %s987_s12 = sphi %s1055_s12, %s1407_s12  }
   0xc   : > { %p1112_p0 = scmp.ge.s32.totalorder %s28_s23, 6  ;;  %p73_p1 = scmp.ne.s32.totalorder %s1007_s17, %s1003_s16 }
   0xd   : > { %p1386_p2 = scmp.eq.s32.totalorder %s1027_s22, 0  ;;  %p1385_p4 = scmp.lt.s32.totalorder %s1027_s22, 12 }
   0xe   : > { %s1418_s23 = smov (%p1112_p0, %s28_s23), 0  ;;  %s164_s27 = sand.u32 1, %s1007_s17  }
   0xf   : > { %p75_p3 = por %p1386_p2, %p73_p1  ;;  %s61_s26 = ssub.s32 %s1019_s20, %s1418_s23 }
  0x10   : > { %s668_s28 = sshll.u32 %s164_s27, 8  ;;  %s670_s29 = sshll.u32 %s1023_s21, 1 }
  0x11   : > { %s719_s30 = sshll.u32 %s1019_s20, 7  ;;  %s168_s4 = scalar_lea.vmem [#allocation2], %s668_s28 }
  0x12   : > { %s178_s5 = sshll.u32 %s168_s4, 4  ;;  %s175_s6 = sadd.s32 %s719_s30, %s670_s29  ;;  %s1131_s5 = int_to_ptr.vmem [resolvable:$true] %s178_s5 }
  0x13   : > { %s672_s7 = sshll.u32 %s175_s6, 6  ;;  %p1135_p5 = pnand %p1385_p4, %p75_p3 }
  0x14   : > { %s1393_s1 = sld [smem:[#allocation9_spill]]  ;;  %s1145_s28 = scalar_lea.sflag [#allocation3], %s164_s27 }
  0x15   : > { %p875_p8 = pneg %p1135_p5 }
  0x1a   : > { %s1142_s11 = scalar_lea.hbm %s1393_s1, %s672_s7  ;;  %s878_s6 = scalar_lea.hbm %s1393_s1, 49152 }
  0x1b   : > { %s873_s29 = scalar_lea.hbm %s1142_s11, 4096  ;;  %p879_p11 = scmp.lt.u32.totalorder %s1142_s11, %s1393_s1 }
  0x1c   : > { %p874_p7 = scmp.ne.s32.totalorder %s1142_s11, %s873_s29  ;;  %p880_p12 = scmp.lt.u32.totalorder %s878_s6, %s873_s29 }
  0x1d   : > { %p882_p1 = scmp.lt.u32.totalorder %s873_s29, %s1142_s11 }
  0x1e   : > { %p876_p9 = pnand %p875_p8, %p874_p7  ;;  %p881_p13 = por %p880_p12, %p879_p11 }
  0x20   : > { %p877_p10 = pneg %p876_p9  ;;  %p883_p3 = por %p882_p1, %p881_p13 }
  0x22   : > { %p884_p4 = pnand %p883_p3, %p877_p10 }
  0x24   : > { %887 = shalt.err (!%p884_p4)
}
  0x25   : > { %s888_s27 = scalar_lea.vmem %s1131_s5, 4096  ;;  %s1029_s10 = smov [#allocation2]  }
  0x26   : > { %p889_p7 = scmp.ne.s32.totalorder %s1131_s5, %s888_s27  ;;  %s893_s30 = sshll.u32 %s1029_s10, 4  ;;  %s894_s30 = int_to_ptr.vmem [resolvable:$false] %s893_s30 }
  0x27   : > { %s895_s4 = scalar_lea.vmem %s894_s30, 8192  ;;  %p896_p6 = scmp.lt.s32.totalorder %s1131_s5, %s894_s30 }
  0x28   : > { %p891_p9 = pnand %p889_p7, %p875_p8  ;;  %p897_p11 = scmp.lt.s32.totalorder %s895_s4, %s888_s27 }
  0x2a   : > { %p892_p2 = pneg %p891_p9  ;;  %p898_p12 = por %p897_p11, %p896_p6 }
  0x2c   : > { %p899_p13 = pnand %p898_p12, %p892_p2 }
  0x2e   : > { %902 = shalt.err (!%p899_p13)
}
  0x2f   : > { %s1030_s29 = smov 256   ;;  %s1031_s6 = smov 128  }
  0x30   : > { %s1032_s7 = smov 8   ;;  %p205_p2 = scmp.lt.s32.totalorder %s1027_s22, 13 }
  0x31   : > { %728 = dma.hbm_to_vmem [thread:$0]  (!%p1135_p5), %s1142_s11, 4096, %s1131_s5, %s1145_s28, %s1030_s29, %s1031_s6, %s1032_s7  }
  0x32   : > { %p1394_p4 = scmp.ge.s32.totalorder %s1027_s22, 1  ;;  %s664_s27 = sadd.s32 4294967295, %s1027_s22  }
  0x33   : > { %s31_s10 = sadd.s32 1, %s1023_s21  ;;  %p79_p8 = scmp.ne.s32.totalorder %s1003_s16, %s999_s15 }
  0x34   : > { %p1176_p6 = pnand %p1394_p4, %p205_p2  ;;  %s1420_s10 = smov (!%p1112_p0, %s31_s10), %s1023_s21 }
  0x35   : > { %p1187_p10 = scmp.eq.s32.totalorder %s664_s27, 0  ;;  %p33_p5 = scmp.ge.s32.totalorder %s1420_s10, 2 }
  0x36   : > { %s92_s5 = sadd.s32 1, %s995_s14  ;;  %p99_p3 = scmp.ne.s32.totalorder %s995_s14, %s991_s13 }
  0x37   : > { %p1194_p1 = por %p1187_p10, %p79_p8  ;;  %s1422_s10 = smov (%p33_p5, %s1420_s10), 0 }
  0x38   : > { %1398 = sst [smem:[#allocation8_spill]] %s1422_s10  ;;  %p1399_p0 = scmp.eq.s32.totalorder %s1027_s22, 0 }
  0x39   : > { %s1397_s11 = scalar_select %p1194_p1, 1, 0 }
  0x3a   : > { %p1204_p7 = por %p99_p3, %p1399_p0  ;;  %p105_p9 = scmp.ne.s32.totalorder %s991_s13, %s987_s12 }
  0x3b   : > { %s62_s25 = ssub.s32 %s1023_s21, %s1422_s10  ;;  %s188_s28 = sand.u32 1, %s995_s14  }
  0x3c   : > { %s63_s30 = sor.u32 %s62_s25, %s61_s26  ;;  %p90_p11 = scmp.eq.s32.totalorder %s62_s25, 0 }
  0x3d   : > { %p64_p12 = scmp.eq.s32.totalorder %s63_s30, 0  ;;  %p1218_p13 = por %p105_p9, %p1187_p10 }
  0x3e   : > { %s1223_s29 = scalar_select %p90_p11, %s995_s14, %s92_s5  }
  0x3f   : > { %s1401_s4 = scalar_select %p1218_p13, 1, 0 }
  0x40   : > { %s1228_s6 = scalar_select %p64_p12, %s1007_s17, %s66_s24  }
  0x41   : > { %s673_s7 = sshll.u32 %s188_s28, 1  ;;  %s720_s27 = sshll.u32 %s1023_s21, 5 }
  0x42   : > { %s1234_s10 = scalar_lea.hbm %s1383_s2, %s720_s27  ;;  %s192_s26 = scalar_lea.vmem [#allocation4], %s673_s7 }
  0x43   : > { %s200_s8 = sshll.u32 %s192_s26, 4  ;;  %p1402_p2 = scmp.lt.s32.totalorder %s1027_s22, 12  ;;  %s1236_s8 = int_to_ptr.vmem [resolvable:$true] %s200_s8 }
  0x44   : > { %s189_s5 = scalar_lea.sflag [#allocation5], %s188_s28  ;;  %s903_s1 = scalar_lea.hbm %s1234_s10, 32 }
  0x45   : > { %p1242_p4 = pnand %p1402_p2, %p1204_p7  ;;  %p904_p8 = scmp.ne.s32.totalorder %s1234_s10, %s903_s1 }
  0x46   : > { %s908_s15 = scalar_lea.hbm %s1383_s2, 64  ;;  %p909_p0 = scmp.lt.u32.totalorder %s1234_s10, %s1383_s2 }
  0x47   : > { %p905_p10 = pneg %p1242_p4  ;;  %p910_p7 = scmp.lt.u32.totalorder %s908_s15, %s903_s1 }
  0x48   : > { %p912_p11 = scmp.lt.u32.totalorder %s903_s1, %s1234_s10 }
  0x49   : > { %p906_p5 = pnand %p905_p10, %p904_p8  ;;  %p911_p9 = por %p910_p7, %p909_p0 }
  0x4b   : > { %p907_p3 = pneg %p906_p5  ;;  %p913_p12 = por %p912_p11, %p911_p9 }
  0x4d   : > { %p914_p2 = pnand %p913_p12, %p907_p3 }
  0x4f   : > { %917 = shalt.err (!%p914_p2)
}
  0x50   : > { %s918_s28 = scalar_lea.vmem %s1236_s8, 32  ;;  %s1033_s12 = smov [#allocation4]  }
  0x51   : > { %p919_p8 = scmp.ne.s32.totalorder %s1236_s8, %s918_s28  ;;  %s923_s26 = sshll.u32 %s1033_s12, 4  ;;  %s924_s26 = int_to_ptr.vmem [resolvable:$false] %s923_s26 }
  0x52   : > { %s925_s25 = scalar_lea.vmem %s924_s26, 64  ;;  %p926_p1 = scmp.lt.s32.totalorder %s1236_s8, %s924_s26 }
  0x53   : > { %p921_p5 = pnand %p919_p8, %p905_p10  ;;  %p927_p0 = scmp.lt.s32.totalorder %s925_s25, %s918_s28 }
  0x55   : > { %p922_p13 = pneg %p921_p5  ;;  %p928_p7 = por %p927_p0, %p926_p1 }
  0x57   : > { %p929_p9 = pnand %p928_p7, %p922_p13 }
  0x59   : > { %932 = shalt.err (!%p929_p9)
}
  0x5a   : > { %731 = dma.hbm_to_vmem [thread:$0]  (!%p1242_p4), %s1234_s10, 32, %s1236_s8, %s189_s5  }
  0x5b   : > { %209 = sbr.rel (%p1176_p6) target bundleno = 411 (0x19b), region = 32  ;;  %s211_s1 = sand.u32 (!%p1176_p6), 1, %s1003_s16  }
  0x5c   : > { %s677_s30 = sshll.u32 (!%p1176_p6), %s211_s1, 8  ;;  %s212_s15 = scalar_lea.sflag (!%p1176_p6), [#allocation3], %s211_s1 }
  0x5d   : > { %s1274_s7 = scalar_lea.vmem (!%p1176_p6), [#allocation2], %s677_s30  ;;  %p1404_p10 = scmp.ne.s32.totalorder (!%p1176_p6), %s1397_s11, 0 }
  0x62   : > { %978 = dma.done.wait (%p1404_p10), %s212_s15, 4096  }
  0x63   : > { %980 = vsyncadd (%p1404_p10), %s212_s15, 4294963200  ;;  %s220_s24 = sand.u32 1, %s991_s13   ;;  %p1405_p6 = scmp.ne.s32.totalorder %s1401_s4, 0 }
  0x64   : > { %s1281_s27 = sshll.u32 %s220_s24, 1  ;;  %s221_s9 = scalar_lea.sflag [#allocation5], %s220_s24 }
  0x65   : > { %s224_s10 = scalar_lea.vmem [#allocation4], %s1281_s27 }
  0x66   : > { %982 = dma.done.wait (%p1405_p6), %s221_s9, 32  }
  0x67   : > { %984 = vsyncadd (%p1405_p6), %s221_s9, 4294967264  ;;  %s679_s8 = sshll.u32 %s1011_s18, 1  ;;  %s681_s5 = sshll.u32 %s1015_s19, 1 }
  0x68   : > { %p258_p1 = scmp.lt.s32.totalorder %s679_s8, 11  ;;  %p267_p13 = scmp.lt.s32.totalorder %s681_s5, 3 }
  0x69   : > { %p683_p4 = scmp.ne.s32.totalorder %s1011_s18, 0 }
  0x6a   : > { %s1424_s8 = smov (!%p258_p1, %s679_s8), 11  ;;  %s1426_s5 = smov (!%p267_p13, %s681_s5), 3 }
  0x6b   : > { %s680_s11 = sshll.u32 %s1424_s8, 3  ;;  %s682_s25 = sshll.u32 %s1426_s5, 3  ;;  %v1034_v0 = vmov (!%p683_p4), 0.0  }
  0x6c   : > { %s1293_s26 = scalar_lea.vmem %s1381_s0, %s680_s11  ;;  %s1298_s4 = scalar_lea.vmem %s1384_s3, %s682_s25 }
  0x6d   : > { %275 = sbr.rel (%p683_p4) target bundleno = 116 (0x74), region = 44  ;;  %276 = vst [vmem:[%s1298_s4] sm:$0xff] (!%p683_p4), %v1034_v0  ;;  %277 = vst [vmem:[%s1298_s4 + $0x8] sm:$0xff] (!%p683_p4), %v1034_v0 }
  0x74 PF: > { %v825_v1 = vld [vmem:[%s1274_s7 + $0x4] ss:$8 sps:$4 sm:$0xff]   ;;  %v827_v2 = vld [vmem:[%s1274_s7] ss:$8 sps:$4 sm:$0xff]   ;;  %v828_v3 = vld [vmem:[%s1274_s7 + $0x14] ss:$8 sps:$4 sm:$0xff]  }
  0x75   : > { %476 = vmatprep.subr.bf16.mxu0 %v825_v1  ;;  %v830_v4 = vld [vmem:[%s1274_s7 + $0x10] ss:$8 sps:$4 sm:$0xff]   ;;  %v831_v5 = vld [vmem:[%s1274_s7 + $0x24] ss:$8 sps:$4 sm:$0xff]   ;;  %v833_v6 = vld [vmem:[%s1274_s7 + $0x20] ss:$8 sps:$4 sm:$0xff]  }
  0x76   : > { %477 = vmatpush1.bf16.msra.mxu0 %v827_v2  ;;  %v834_v7 = vld [vmem:[%s1274_s7 + $0x34] ss:$8 sps:$4 sm:$0xff]   ;;  %v836_v8 = vld [vmem:[%s1274_s7 + $0x30] ss:$8 sps:$4 sm:$0xff]   ;;  %v837_v9 = vld [vmem:[%s1274_s7 + $0x44] ss:$8 sps:$4 sm:$0xff]  }
  0x77   : > { %478 = vmatprep.subr.bf16.mxu0 %v828_v3  ;;  %v839_v10 = vld [vmem:[%s1274_s7 + $0x40] ss:$8 sps:$4 sm:$0xff]   ;;  %v840_v11 = vld [vmem:[%s1274_s7 + $0x54] ss:$8 sps:$4 sm:$0xff]   ;;  %v842_v12 = vld [vmem:[%s1274_s7 + $0x50] ss:$8 sps:$4 sm:$0xff]  }
  0x78   : > { %v843_v13 = vld [vmem:[%s1274_s7 + $0x64] ss:$8 sps:$4 sm:$0xff]   ;;  %v845_v16 = vld [vmem:[%s1274_s7 + $0x60] ss:$8 sps:$4 sm:$0xff]   ;;  %v846_v17 = vld [vmem:[%s1274_s7 + $0x74] ss:$8 sps:$4 sm:$0xff]  }
  0x79   : > { %v279_v14 = vld [vmem:[%s1293_s26 + $0x8] sm:$0xff]  ;;  %v848_v18 = vld [vmem:[%s1274_s7 + $0x70] ss:$8 sps:$4 sm:$0xff]   ;;  %v852_v21 = vld [vmem:[%s1274_s7 + $0x94] ss:$8 sps:$4 sm:$0xff]   ;;  %p716_p3 = scmp.ne.s32.totalorder %s1011_s18, 5 }
  0x7a   : > { %479 = vmatpush1.bf16.msra.mxu0 %v830_v4  ;;  %v281_v15 = vpack.c.bf16 %v279_v14, %v279_v14  ;;  %v849_v19 = vld [vmem:[%s1274_s7 + $0x84] ss:$8 sps:$4 sm:$0xff]   ;;  %v851_v20 = vld [vmem:[%s1274_s7 + $0x80] ss:$8 sps:$4 sm:$0xff]   ;;  %v854_v22 = vld [vmem:[%s1274_s7 + $0x90] ss:$8 sps:$4 sm:$0xff]   ;;  %v529_v45 = vlaneseq (!%p716_p3) }
  0x7b   : > { %480 = vmatprep.subr.bf16.mxu0 %v831_v5  ;;  %v855_v23 = vld [vmem:[%s1274_s7 + $0xa4] ss:$8 sps:$4 sm:$0xff]   ;;  %v857_v24 = vld [vmem:[%s1274_s7 + $0xa0] ss:$8 sps:$4 sm:$0xff]   ;;  %v858_v25 = vld [vmem:[%s1274_s7 + $0xb4] ss:$8 sps:$4 sm:$0xff]  }
  0x7c   : > { %508 = vmatprep.mubr.bf16.mxu0 %v281_v15  ;;  %v860_v26 = vld [vmem:[%s1274_s7 + $0xb0] ss:$8 sps:$4 sm:$0xff]   ;;  %v861_v27 = vld [vmem:[%s1274_s7 + $0xc4] ss:$8 sps:$4 sm:$0xff]   ;;  %v863_v28 = vld [vmem:[%s1274_s7 + $0xc0] ss:$8 sps:$4 sm:$0xff]  }
  0x7d   : > { %v864_v29 = vld [vmem:[%s1274_s7 + $0xd4] ss:$8 sps:$4 sm:$0xff]   ;;  %v866_v30 = vld [vmem:[%s1274_s7 + $0xd0] ss:$8 sps:$4 sm:$0xff]   ;;  %v867_v31 = vld [vmem:[%s1274_s7 + $0xe4] ss:$8 sps:$4 sm:$0xff]  }
  0x7e   : > { %481 = vmatpush1.bf16.msra.mxu0 %v833_v6  ;;  %v869_v32 = vld [vmem:[%s1274_s7 + $0xe0] ss:$8 sps:$4 sm:$0xff]   ;;  %v870_v33 = vld [vmem:[%s1274_s7 + $0xf4] ss:$8 sps:$4 sm:$0xff]   ;;  %v872_v34 = vld [vmem:[%s1274_s7 + $0xf0] ss:$8 sps:$4 sm:$0xff]  }
  0x7f   : > { %482 = vmatprep.subr.bf16.mxu0 %v834_v7  ;;  %v278_v35 = vld [vmem:[%s1293_s26] sm:$0xff]  ;;  %v283_v38 = vld [vmem:[%s1298_s4 + $0x8] sm:$0xff]  ;;  %v530_v46 = vshrl.u32 (!%p716_p3), %v529_v45, 7 }
  0x80   : > { %v280_v36 = vpack.c.bf16 %v278_v35, %v278_v35  ;;  %v282_v37 = vld [vmem:[%s1298_s4] sm:$0xff] }
  0x81   : > { %v527_v47 = vld [vmem:[%s224_s10] sm:$0x3] (!%p716_p3)  ;;  %v531_v48 = vsub.s32 (!%p716_p3), 0, %v530_v46  ;;  %v535_v49 = vsub.s32 (!%p716_p3), 1, %v530_v46 }
  0x82   : > { %483 = vmatpush1.bf16.msra.mxu0 %v836_v8 }
  0x83   : > { %484 = vmatprep.subr.bf16.mxu0 %v837_v9  ;;  %v532_v52 = vrot.slane (!%p716_p3), %v527_v47, %v531_v48  ;;  %v536_v53 = vrot.slane (!%p716_p3), %v527_v47, %v535_v49 }
  0x86   : > { %485 = vmatpush1.bf16.msra.mxu0 %v839_v10 }
  0x87   : > { %486 = vmatprep.subr.bf16.mxu0 %v840_v11 }
  0x8a   : > { %487 = vmatpush1.bf16.msra.mxu0 %v842_v12 }
  0x8b   : > { %488 = vmatprep.subr.bf16.mxu0 %v843_v13 }
  0x8e   : > { %489 = vmatpush1.bf16.msra.mxu0 %v845_v16 }
  0x8f   : > { %490 = vmatprep.subr.bf16.mxu0 %v846_v17 }
  0x92   : > { %491 = vmatpush1.bf16.msra.mxu0 %v848_v18 }
  0x93   : > { %492 = vmatprep.subr.bf16.mxu0 %v849_v19 }
  0x96   : > { %493 = vmatpush1.bf16.msra.mxu0 %v851_v20 }
  0x97   : > { %494 = vmatprep.subr.bf16.mxu0 %v852_v21 }
  0x9a   : > { %495 = vmatpush1.bf16.msra.mxu0 %v854_v22 }
  0x9b   : > { %496 = vmatprep.subr.bf16.mxu0 %v855_v23 }
  0x9e   : > { %497 = vmatpush1.bf16.msra.mxu0 %v857_v24 }
  0x9f   : > { %498 = vmatprep.subr.bf16.mxu0 %v858_v25 }
  0xa2   : > { %499 = vmatpush1.bf16.msra.mxu0 %v860_v26 }
  0xa3   : > { %500 = vmatprep.subr.bf16.mxu0 %v861_v27 }
  0xa6   : > { %501 = vmatpush1.bf16.msra.mxu0 %v863_v28 }
  0xa7   : > { %502 = vmatprep.subr.bf16.mxu0 %v864_v29 }
  0xaa   : > { %503 = vmatpush1.bf16.msra.mxu0 %v866_v30 }
  0xab   : > { %504 = vmatprep.subr.bf16.mxu0 %v867_v31 }
  0xae   : > { %505 = vmatpush1.bf16.msra.mxu0 %v869_v32 }
  0xaf   : > { %506 = vmatprep.subr.bf16.mxu0 %v870_v33 }
  0xb2   : > { %507 = vmatpush1.bf16.msra.mxu0 %v872_v34 }
  0xb5   : > { %509 = vmatmul.mubr.bf16.vlgmr.msra.gmra.mrb[0].mxu0 %v280_v36 }
 0x186   : > { %524 = sbr.rel (%p716_p3) target bundleno = 411 (0x19b), region = 48 }
 0x188   : > { %v510_v39 = vpop.f32.mrb[0].mxu0 }
 0x189   : > { %v517_v40 = vadd.f32 %v510_v39, %v282_v37  ;;  %v512_v41 = vpop.f32.mrb[1].mxu0 }
 0x18a   : > { %v518_v42 = vadd.f32 %v512_v41, %v283_v38  ;;  %v514_v43 = vpop.f32.mrb[2].mxu0 }
 0x18b   : > { %519 = vst [vmem:[%s1298_s4] sm:$0xff] %v517_v40  ;;  %v515_v44 = vpop.f32.mrb[3].mxu0 }
 0x18c   : > { %520 = vst [vmem:[%s1298_s4 + $0x8] sm:$0xff] %v518_v42 }
 0x192   : > { %v525_v50 = vld [vmem:[%s1298_s4] sm:$0xff] }
 0x193   : > { %v526_v51 = vld [vmem:[%s1298_s4 + $0x8] sm:$0xff]  ;;  %v539_v54 = vadd.f32 %v532_v52, %v525_v50 }
 0x194   : > { %v540_v55 = vadd.f32 %v536_v53, %v526_v51 }
 0x195   : > { %v541_v56 = vmul.f32 0.1, %v539_v54 }
 0x196   : > { %v542_v57 = vmul.f32 0.1, %v540_v55 }
 0x197   : > { %v543_v58 = vmax.f32 %v539_v54, %v541_v56 }
 0x198   : > { %v544_v59 = vmax.f32 %v540_v55, %v542_v57 }
 0x199   : > { %545 = vst [vmem:[%s1298_s4] sm:$0xff] %v543_v58 }
 0x19a   : > { %546 = vst [vmem:[%s1298_s4 + $0x8] sm:$0xff] %v544_v59 }
 0x19b PF: > { %s19_s22 = sadd.s32 1, %s1027_s22   ;;  %s1406_s7 = sld [smem:[#allocation8_spill]] }
 0x19c   : > { %p16_p11 = scmp.ge.s32.totalorder %s19_s22, 14   ;;  %s1407_s12 = smov %s991_s13 }
 0x19d   : > { %s1408_s13 = smov %s995_s14  ;;  %s1409_s14 = smov %s1223_s29 }
 0x19e   : > { %s1410_s15 = smov %s1003_s16  ;;  %s1411_s16 = smov %s1007_s17 }
 0x19f   : > { %s1412_s17 = smov %s1228_s6  ;;  %s1413_s18 = smov %s1019_s20 }
 0x1a0   : > { %s1414_s19 = smov %s1023_s21  ;;  %s1415_s20 = smov %s1418_s23 }
 0x1a1   : > { %s1416_s21 = smov %s1406_s7  ;;  %18 = sbr.rel (!%p16_p11) target bundleno = 11 (0xb), region = 96 }
 0x1a8   :  { %569 = vsyncpa [#allocation3], 1 }
 0x1a9   :  { %571 = vsyncpa [#allocation3 + $0x1], 1 }
 0x1aa   :  { %572 = vsyncpa [#allocation5], 1 }
 0x1ab   :  { %574 = vsyncpa [#allocation5 + $0x1], 1 }

// kernel: linear_model_forward.5
= control target key start
LH: loop header
LB: loop body
LE: loop exit
PB: predicated region body
PF: predicated region fallthrough
CT: control target
= control target key end

     0   :  { %s701_s12 = smov 0   ;;  %s703_s13 = smov 0   ;;  %s772_s0 = inlined_call_operand.vmem [shape: bf16[8,32], index: 0, kind: input, shape index: {}]   ;;  %s773_s1 = inlined_call_operand.vmem [shape: bf16[32,1536], index: 1, kind: input, shape index: {}]   ;;  %s774_s2 = inlined_call_operand.vmem [shape: f32[1,1536], index: 2, kind: input, shape index: {}]   ;;  %s775_s3 = inlined_call_operand.vmem [shape: f32[8,1536], index: 3, kind: output, shape index: {}]  }
   0x1   :  { %s705_s14 = smov 0   ;;  %s707_s15 = smov 0  }
   0x2   :  { %s709_s16 = smov 0  }
   0x3 LB: > { %s25_s17 = sadd.s32 1, %s674_s15  ;;  %p67_p1 = scmp.ne.s32.totalorder %s666_s13, %s662_s12  ;;  %s678_s16 = sphi %s709_s16, %s13_s16   ;;  %s674_s15 = sphi %s707_s15, %s779_s15   ;;  %s670_s14 = sphi %s705_s14, %s778_s14   ;;  %s666_s13 = sphi %s703_s13, %s777_s13   ;;  %s662_s12 = sphi %s701_s12, %s776_s12  }
   0x4   : > { %p27_p0 = scmp.ge.s32.totalorder %s25_s17, 3  ;;  %p68_p2 = scmp.eq.s32.totalorder %s678_s16, 0 }
   0x5   : > { %s60_s19 = sadd.s32 1, %s666_s13  ;;  %p564_p5 = scmp.ge.s32.totalorder %s678_s16, 3 }
   0x6   : > { %s781_s17 = smov (%p27_p0, %s25_s17), 0  ;;  %p69_p3 = por %p68_p2, %p67_p1 }
   0x7   : > { %s56_s18 = ssub.s32 %s674_s15, %s781_s17  ;;  %152 = sbr.rel (%p564_p5) target bundleno = 22 (0x16), region = 20 }
   0x8   : > { %p58_p4 = scmp.eq.s32.totalorder %s56_s18, 0 }
   0xa   : > { %s736_s20 = scalar_select %p58_p4, %s666_s13, %s60_s19  }
   0xe   : > { %155 = sbr.rel (!%p69_p3) target bundleno = 22 (0x16), region = 24  ;;  %s157_s21 = sand.u32 (%p69_p3), 1, %s666_s13  }
   0xf   : > { %s585_s22 = sshll.u32 (%p69_p3), %s674_s15, 4  ;;  %s565_s23 = sshll.u32 (%p69_p3), %s157_s21, 6 }
  0x10   : > { %s165_s26 = scalar_lea.vmem (%p69_p3), %s773_s1, %s585_s22  ;;  %s159_s27 = scalar_lea.vmem (%p69_p3), [#allocation2], %s565_s23 }
  0x11   : > { %v178_v0 = vld [vmem:[%s165_s26] sm:$0xff] (%p69_p3)  ;;  %v180_v1 = vld [vmem:[%s165_s26 + $0x8] sm:$0xff] (%p69_p3)  ;;  %v182_v2 = vld [vmem:[%s165_s26 + $0x30] sm:$0xff] (%p69_p3) }
  0x12   : > { %179 = vst [vmem:[%s159_s27] sm:$0xff] (%p69_p3), %v178_v0  ;;  %181 = vst [vmem:[%s159_s27 + $0x8] sm:$0xff] (%p69_p3), %v180_v1  ;;  %v184_v3 = vld [vmem:[%s165_s26 + $0x38] sm:$0xff] (%p69_p3)  ;;  %v186_v4 = vld [vmem:[%s165_s26 + $0x60] sm:$0xff] (%p69_p3) }
  0x13   : > { %183 = vst [vmem:[%s159_s27 + $0x10] sm:$0xff] (%p69_p3), %v182_v2  ;;  %v188_v5 = vld [vmem:[%s165_s26 + $0x68] sm:$0xff] (%p69_p3)  ;;  %185 = vst [vmem:[%s159_s27 + $0x18] sm:$0xff] (%p69_p3), %v184_v3  ;;  %v190_v6 = vld [vmem:[%s165_s26 + $0x90] sm:$0xff] (%p69_p3) }
  0x14   : > { %187 = vst [vmem:[%s159_s27 + $0x20] sm:$0xff] (%p69_p3), %v186_v4  ;;  %189 = vst [vmem:[%s159_s27 + $0x28] sm:$0xff] (%p69_p3), %v188_v5  ;;  %v192_v7 = vld [vmem:[%s165_s26 + $0x98] sm:$0xff] (%p69_p3) }
  0x15   : > { %191 = vst [vmem:[%s159_s27 + $0x30] sm:$0xff] %v190_v6  ;;  %193 = vst [vmem:[%s159_s27 + $0x38] sm:$0xff] %v192_v7 }
  0x16 PF: > { %p568_p6 = scmp.ge.s32.totalorder %s678_s16, 1  ;;  %p206_p7 = scmp.lt.s32.totalorder %s678_s16, 4 }
  0x18   : > { %p207_p8 = pnand %p568_p6, %p206_p7 }
  0x19   : > { %s213_s28 = sand.u32 (!%p207_p8), 1, %s662_s12   ;;  %v680_v8 = vmov (!%p207_p8), 0   ;;  %v270_v17 = vld [vmem:[%s772_s0] sm:$0xf] (!%p207_p8)  ;;  %vm323_vm0 = vcmask (!%p207_p8), 261120   ;;  %s570_s6 = sshll.u32 (!%p207_p8), %s670_s14, 2  ;;  %v426_v18 = vlaneseq (!%p207_p8) }
  0x1a   : > { %210 = sbr.rel (%p207_p8) target bundleno = 257 (0x101), region = 51  ;;  %s569_s29 = sshll.u32 (!%p207_p8), %s213_s28, 6  ;;  %359 = vmatprep.mubr.bf16.mxu0 (!%p207_p8), %v680_v8  ;;  %400 = vmatprep.mubr.bf16.mxu1 (!%p207_p8), %v680_v8 }
  0x1b   : > { %s215_s30 = scalar_lea.vmem (!%p207_p8), [#allocation2], %s569_s29  ;;  %p251_p9 = scmp.lt.s32.totalorder (!%p207_p8), %s570_s6, 11  ;;  %v427_v19 = vshrl.u32 (!%p207_p8), %v426_v18, 7 }
  0x1c   : > { %v628_v9 = vld [vmem:[%s215_s30 + $0x4] ss:$16 sps:$4 sm:$0xff] (!%p207_p8)   ;;  %v630_v10 = vld [vmem:[%s215_s30 + $0xc] ss:$16 sps:$4 sm:$0xff] (!%p207_p8)   ;;  %v632_v11 = vld [vmem:[%s215_s30] ss:$16 sps:$4 sm:$0xff] (!%p207_p8)  }
  0x1d   : > { %327 = vmatprep.subr.bf16.mxu0 (!%p207_p8), %v628_v9  ;;  %v633_v12 = vld [vmem:[%s215_s30 + $0x8] ss:$16 sps:$4 sm:$0xff] (!%p207_p8)   ;;  %368 = vmatprep.subr.bf16.mxu1 (!%p207_p8), %v630_v10  ;;  %v634_v13 = vld [vmem:[%s215_s30 + $0x24] ss:$16 sps:$4 sm:$0xff] (!%p207_p8)   ;;  %v636_v14 = vld [vmem:[%s215_s30 + $0x2c] ss:$16 sps:$4 sm:$0xff] (!%p207_p8)  }
  0x1e   : > { %328 = vmatpush1.bf16.msra.mxu0 (!%p207_p8), %v632_v11  ;;  %369 = vmatpush1.bf16.msra.mxu1 (!%p207_p8), %v633_v12  ;;  %v638_v15 = vld [vmem:[%s215_s30 + $0x20] ss:$16 sps:$4 sm:$0xff] (!%p207_p8)   ;;  %v639_v16 = vld [vmem:[%s215_s30 + $0x28] ss:$16 sps:$4 sm:$0xff] (!%p207_p8)   ;;  %v428_v20 = vsub.s32 (!%p207_p8), 0, %v427_v19  ;;  %v436_v21 = vsub.s32 (!%p207_p8), 2, %v427_v19 }
  0x1f   : > { %329 = vmatprep.subr.bf16.mxu0 (!%p207_p8), %v634_v13  ;;  %370 = vmatprep.subr.bf16.mxu1 (!%p207_p8), %v636_v14  ;;  %v432_v23 = vsub.s32 (!%p207_p8), 1, %v427_v19  ;;  %v440_v24 = vsub.s32 (!%p207_p8), 3, %v427_v19 }
  0x21   : > { %s783_s6 = smov (!%p251_p9, %s570_s6), 11 }
  0x22   : > { %330 = vmatpush1.bf16.msra.mxu0 %v638_v15  ;;  %371 = vmatpush1.bf16.msra.mxu1 %v639_v16  ;;  %s253_s9 = scalar_lea.vmem %s774_s2, %s783_s6  ;;  %s572_s10 = sshll.u32 %s783_s6, 3 }
  0x23   : > { %v424_v22 = vld [vmem:[%s253_s9] sm:$0xf]  ;;  %s259_s14 = scalar_lea.vmem %s775_s3, %s572_s10 }
  0x24   : > { %v429_v25 = vrot.slane %v424_v22, %v428_v20  ;;  %v437_v26 = vrot.slane %v424_v22, %v436_v21  ;;  %v433_v29 = vrot.slane %v424_v22, %v432_v23  ;;  %v441_v30 = vrot.slane %v424_v22, %v440_v24 }
  0x25   : > { %581 = vmatmul.mubr.msk.bf16.vlgmr.msra.gmra.mrb[0].mxu0 %vm323_vm0, %v270_v17  ;;  %582 = vmatmul.mubr.msk.bf16.vlgmr.msra.gmra.mrb[0].mxu1 %vm323_vm0, %v270_v17 }
  0xf8   : > { %v361_v27 = vpop.f32.mrb[0].mxu0  ;;  %v402_v28 = vpop.f32.mrb[0].mxu1 }
  0xf9   : > { %v363_v31 = vpop.f32.mrb[1].mxu0  ;;  %v404_v32 = vpop.f32.mrb[1].mxu1  ;;  %v446_v35 = vadd.f32 %v429_v25, %v361_v27  ;;  %v448_v36 = vadd.f32 %v437_v26, %v402_v28 }
  0xfa   : > { %v365_v33 = vpop.f32.mrb[2].mxu0  ;;  %v406_v34 = vpop.f32.mrb[2].mxu1  ;;  %v447_v39 = vadd.f32 %v433_v29, %v363_v31  ;;  %v449_v40 = vadd.f32 %v441_v30, %v404_v32 }
  0xfb   : > { %v366_v37 = vpop.f32.mrb[3].mxu0  ;;  %v407_v38 = vpop.f32.mrb[3].mxu1  ;;  %v450_v41 = vmul.f32 0.1, %v446_v35  ;;  %v452_v42 = vmul.f32 0.1, %v448_v36 }
  0xfc   : > { %v451_v43 = vmul.f32 0.1, %v447_v39  ;;  %v453_v44 = vmul.f32 0.1, %v449_v40 }
  0xfd   : > { %v454_v45 = vmax.f32 %v446_v35, %v450_v41  ;;  %v456_v46 = vmax.f32 %v448_v36, %v452_v42 }
  0xfe   : > { %v455_v47 = vmax.f32 %v447_v39, %v451_v43  ;;  %v457_v48 = vmax.f32 %v449_v40, %v453_v44 }
  0xff   : > { %458 = vst [vmem:[%s259_s14] sm:$0xff] %v454_v45  ;;  %460 = vst [vmem:[%s259_s14 + $0x10] sm:$0xff] %v456_v46 }
 0x100   : > { %459 = vst [vmem:[%s259_s14 + $0x8] sm:$0xff] %v455_v47  ;;  %461 = vst [vmem:[%s259_s14 + $0x18] sm:$0xff] %v457_v48 }
 0x101 PF: > { %s13_s16 = sadd.s32 1, %s678_s16   ;;  %s776_s12 = smov %s666_s13 }
 0x102   : > { %p10_p10 = scmp.ge.s32.totalorder %s13_s16, 5   ;;  %s777_s13 = smov %s736_s20 }
 0x103   : > { %s778_s14 = smov %s674_s15  ;;  %s779_s15 = smov %s781_s17 }
 0x104   :  { %12 = sbr.rel (!%p10_p10) target bundleno = 3 (0x3), region = 104 }

// kernel: linear_model_forward.4
= control target key start
LH: loop header
LB: loop body
LE: loop exit
PB: predicated region body
PF: predicated region fallthrough
CT: control target
= control target key end

     0   :  { %vm1206_vm0 = vmmov 0   ;;  %vm856_vm1 = vcmask 523264   ;;  %vm903_vm2 = vcmask 257024   ;;  %s1576_s1 = inlined_call_operand.vmem [shape: bf16[512,256], index: 1, kind: input, shape index: {}]   ;;  %s1577_s0 = inlined_call_operand.vmem [shape: f32[8,512], index: 0, kind: input, shape index: {}]   ;;  %s1578_s3 = inlined_call_operand.vmem [shape: bf16[256,128], index: 3, kind: input, shape index: {}]   ;;  %s1579_s5 = inlined_call_operand.vmem [shape: bf16[128,64], index: 5, kind: input, shape index: {}]   ;;  %s1580_s2 = inlined_call_operand.vmem [shape: f32[1,256], index: 2, kind: input, shape index: {}]   ;;  %s1581_s7 = inlined_call_operand.vmem [shape: bf16[64,32], index: 7, kind: input, shape index: {}]   ;;  %s1582_s4 = inlined_call_operand.vmem [shape: f32[1,128], index: 4, kind: input, shape index: {}]   ;;  %s1583_s6 = inlined_call_operand.vmem [shape: f32[1,64], index: 6, kind: input, shape index: {}]   ;;  %s1584_s8 = inlined_call_operand.vmem [shape: f32[1,32], index: 8, kind: input, shape index: {}]   ;;  %s1585_s9 = inlined_call_operand.vmem [shape: bf16[8,32], index: 9, kind: output, shape index: {}]  }
   0x1   :  { %v1081_v0 = vld [vmem:[%s1576_s1 + $0x4] ss:$8 sps:$4 sm:$0xff]   ;;  %v1083_v1 = vld [vmem:[%s1576_s1] ss:$8 sps:$4 sm:$0xff]   ;;  %v1084_v2 = vld [vmem:[%s1576_s1 + $0x14] ss:$8 sps:$4 sm:$0xff]  }
   0x2   :  { %437 = vmatprep.subr.bf16.mxu0 %v1081_v0  ;;  %v1086_v3 = vld [vmem:[%s1576_s1 + $0x10] ss:$8 sps:$4 sm:$0xff]   ;;  %v1087_v4 = vld [vmem:[%s1576_s1 + $0x24] ss:$8 sps:$4 sm:$0xff]   ;;  %v1089_v5 = vld [vmem:[%s1576_s1 + $0x20] ss:$8 sps:$4 sm:$0xff]  }
   0x3   :  { %438 = vmatpush1.bf16.msra.mxu0 %v1083_v1  ;;  %v1090_v6 = vld [vmem:[%s1576_s1 + $0x34] ss:$8 sps:$4 sm:$0xff]   ;;  %v1092_v7 = vld [vmem:[%s1576_s1 + $0x30] ss:$8 sps:$4 sm:$0xff]   ;;  %v1093_v8 = vld [vmem:[%s1576_s1 + $0x44] ss:$8 sps:$4 sm:$0xff]  }
   0x4   :  { %439 = vmatprep.subr.bf16.mxu0 %v1084_v2  ;;  %v1095_v9 = vld [vmem:[%s1576_s1 + $0x40] ss:$8 sps:$4 sm:$0xff]   ;;  %v1096_v10 = vld [vmem:[%s1576_s1 + $0x54] ss:$8 sps:$4 sm:$0xff]   ;;  %v1098_v11 = vld [vmem:[%s1576_s1 + $0x50] ss:$8 sps:$4 sm:$0xff]  }
   0x5   :  { %v1099_v12 = vld [vmem:[%s1576_s1 + $0x64] ss:$8 sps:$4 sm:$0xff]   ;;  %v1101_v15 = vld [vmem:[%s1576_s1 + $0x60] ss:$8 sps:$4 sm:$0xff]   ;;  %v1102_v16 = vld [vmem:[%s1576_s1 + $0x74] ss:$8 sps:$4 sm:$0xff]  }
   0x6   :  { %v34_v13 = vld [vmem:[%s1577_s0 + $0x8] sm:$0xff]  ;;  %v1104_v17 = vld [vmem:[%s1576_s1 + $0x70] ss:$8 sps:$4 sm:$0xff]   ;;  %v1108_v20 = vld [vmem:[%s1576_s1 + $0x94] ss:$8 sps:$4 sm:$0xff]  }
   0x7   :  { %440 = vmatpush1.bf16.msra.mxu0 %v1086_v3  ;;  %v38_v14 = vpack.c.bf16 %v34_v13, %v34_v13  ;;  %v1105_v18 = vld [vmem:[%s1576_s1 + $0x84] ss:$8 sps:$4 sm:$0xff]   ;;  %v1107_v19 = vld [vmem:[%s1576_s1 + $0x80] ss:$8 sps:$4 sm:$0xff]   ;;  %v1110_v21 = vld [vmem:[%s1576_s1 + $0x90] ss:$8 sps:$4 sm:$0xff]  }
   0x8   :  { %441 = vmatprep.subr.bf16.mxu0 %v1087_v4  ;;  %v1111_v22 = vld [vmem:[%s1576_s1 + $0xa4] ss:$8 sps:$4 sm:$0xff]   ;;  %v1113_v23 = vld [vmem:[%s1576_s1 + $0xa0] ss:$8 sps:$4 sm:$0xff]   ;;  %v1114_v24 = vld [vmem:[%s1576_s1 + $0xb4] ss:$8 sps:$4 sm:$0xff]  }
   0x9   :  { %469 = vmatprep.mubr.bf16.mxu0 %v38_v14  ;;  %v1116_v25 = vld [vmem:[%s1576_s1 + $0xb0] ss:$8 sps:$4 sm:$0xff]   ;;  %v1117_v26 = vld [vmem:[%s1576_s1 + $0xc4] ss:$8 sps:$4 sm:$0xff]   ;;  %v1119_v28 = vld [vmem:[%s1576_s1 + $0xc0] ss:$8 sps:$4 sm:$0xff]  }
   0xa   :  { %v1177_v27 = vld [vmem:[%s1578_s3 + $0x40] sm:$0xff]   ;;  %v1120_v30 = vld [vmem:[%s1576_s1 + $0xd4] ss:$8 sps:$4 sm:$0xff]   ;;  %v1179_v31 = vld [vmem:[%s1578_s3 + $0x48] sm:$0xff]  }
   0xb   :  { %442 = vmatpush1.bf16.msra.mxu0 %v1089_v5  ;;  %v1178_v29 = vld [vmem:[%s1578_s3] sm:$0xff]   ;;  %1005 = vmatprep.subr.bf16.mxu1 %v1177_v27  ;;  %v1180_v32 = vld [vmem:[%s1578_s3 + $0x8] sm:$0xff]   ;;  %v1181_v33 = vld [vmem:[%s1578_s3 + $0x50] sm:$0xff]  }
   0xc   :  { %443 = vmatprep.subr.bf16.mxu0 %v1090_v6  ;;  %1006 = vmatpush3.bf16.msra.mxu1 %v1178_v29  ;;  %v1122_v34 = vld [vmem:[%s1576_s1 + $0xd0] ss:$8 sps:$4 sm:$0xff]   ;;  %v1123_v35 = vld [vmem:[%s1576_s1 + $0xe4] ss:$8 sps:$4 sm:$0xff]   ;;  %v1125_v38 = vld [vmem:[%s1576_s1 + $0xe0] ss:$8 sps:$4 sm:$0xff]  }
   0xd   :  { %1007 = vmatprep.subr.bf16.mxu1 %v1179_v31  ;;  %v1182_v36 = vld [vmem:[%s1578_s3 + $0x10] sm:$0xff]   ;;  %v1183_v37 = vld [vmem:[%s1578_s3 + $0x58] sm:$0xff]   ;;  %v1185_v41 = vld [vmem:[%s1578_s3 + $0x60] sm:$0xff]  }
   0xe   :  { %v1126_v39 = vld [vmem:[%s1576_s1 + $0xf4] ss:$8 sps:$4 sm:$0xff]   ;;  %v1128_v42 = vld [vmem:[%s1576_s1 + $0xf0] ss:$8 sps:$4 sm:$0xff]   ;;  %v33_v43 = vld [vmem:[%s1577_s0] sm:$0xff] }
   0xf   :  { %444 = vmatpush1.bf16.msra.mxu0 %v1092_v7  ;;  %v1184_v40 = vld [vmem:[%s1578_s3 + $0x18] sm:$0xff]   ;;  %v1186_v44 = vld [vmem:[%s1578_s3 + $0x20] sm:$0xff]   ;;  %v1187_v47 = vld [vmem:[%s1578_s3 + $0x68] sm:$0xff]   ;;  %v37_v48 = vpack.c.bf16 %v33_v43, %v33_v43 }
  0x10   :  { %445 = vmatprep.subr.bf16.mxu0 %v1093_v8  ;;  %1008 = vmatpush3.bf16.msra.mxu1 %v1180_v32  ;;  %v1131_v45 = vld [vmem:[%s1576_s1 + $0x104] ss:$8 sps:$4 sm:$0xff]   ;;  %v36_v46 = vld [vmem:[%s1577_s0 + $0x18] sm:$0xff]  ;;  %v1129_v49 = vld [vmem:[%s1576_s1 + $0x100] ss:$8 sps:$4 sm:$0xff]  }
  0x11   :  { %1009 = vmatprep.subr.bf16.mxu1 %v1181_v33  ;;  %v40_v50 = vpack.c.bf16 %v36_v46, %v36_v46  ;;  %v1134_v51 = vld [vmem:[%s1576_s1 + $0x114] ss:$8 sps:$4 sm:$0xff]   ;;  %v1132_v52 = vld [vmem:[%s1576_s1 + $0x110] ss:$8 sps:$4 sm:$0xff]   ;;  %v1137_v53 = vld [vmem:[%s1576_s1 + $0x124] ss:$8 sps:$4 sm:$0xff]  }
  0x12   :  { %v1135_v54 = vld [vmem:[%s1576_s1 + $0x120] ss:$8 sps:$4 sm:$0xff]   ;;  %v1140_v55 = vld [vmem:[%s1576_s1 + $0x134] ss:$8 sps:$4 sm:$0xff]   ;;  %v1138_v56 = vld [vmem:[%s1576_s1 + $0x130] ss:$8 sps:$4 sm:$0xff]  }
  0x13   :  { %446 = vmatpush1.bf16.msra.mxu0 %v1095_v9  ;;  %v1143_v57 = vld [vmem:[%s1576_s1 + $0x144] ss:$8 sps:$4 sm:$0xff]   ;;  %v1141_v58 = vld [vmem:[%s1576_s1 + $0x140] ss:$8 sps:$4 sm:$0xff]   ;;  %v1146_v59 = vld [vmem:[%s1576_s1 + $0x154] ss:$8 sps:$4 sm:$0xff]  }
  0x14   :  { %447 = vmatprep.subr.bf16.mxu0 %v1096_v10  ;;  %1010 = vmatpush3.bf16.msra.mxu1 %v1182_v36  ;;  %v1144_v60 = vld [vmem:[%s1576_s1 + $0x150] ss:$8 sps:$4 sm:$0xff]   ;;  %v1149_v61 = vld [vmem:[%s1576_s1 + $0x164] ss:$8 sps:$4 sm:$0xff]   ;;  %v1147_v62 = vld [vmem:[%s1576_s1 + $0x160] ss:$8 sps:$4 sm:$0xff]  }
  0x15   :  { %1011 = vmatprep.subr.bf16.mxu1 %v1183_v37  ;;  %v1152_v63 = vld [vmem:[%s1576_s1 + $0x174] ss:$8 sps:$4 sm:$0xff]   ;;  %v1150_v0 = vld [vmem:[%s1576_s1 + $0x170] ss:$8 sps:$4 sm:$0xff]   ;;  %v1155_v1 = vld [vmem:[%s1576_s1 + $0x184] ss:$8 sps:$4 sm:$0xff]  }
  0x16   :  { %v1153_v2 = vld [vmem:[%s1576_s1 + $0x180] ss:$8 sps:$4 sm:$0xff]   ;;  %v1158_v3 = vld [vmem:[%s1576_s1 + $0x194] ss:$8 sps:$4 sm:$0xff]   ;;  %v1156_v4 = vld [vmem:[%s1576_s1 + $0x190] ss:$8 sps:$4 sm:$0xff]  }
  0x17   :  { %448 = vmatpush1.bf16.msra.mxu0 %v1098_v11  ;;  %v1161_v5 = vld [vmem:[%s1576_s1 + $0x1a4] ss:$8 sps:$4 sm:$0xff]   ;;  %v1159_v6 = vld [vmem:[%s1576_s1 + $0x1a0] ss:$8 sps:$4 sm:$0xff]   ;;  %v1164_v7 = vld [vmem:[%s1576_s1 + $0x1b4] ss:$8 sps:$4 sm:$0xff]  }
  0x18   :  { %449 = vmatprep.subr.bf16.mxu0 %v1099_v12  ;;  %1012 = vmatpush3.bf16.msra.mxu1 %v1184_v40  ;;  %v1162_v8 = vld [vmem:[%s1576_s1 + $0x1b0] ss:$8 sps:$4 sm:$0xff]   ;;  %v1167_v9 = vld [vmem:[%s1576_s1 + $0x1c4] ss:$8 sps:$4 sm:$0xff]   ;;  %v1165_v10 = vld [vmem:[%s1576_s1 + $0x1c0] ss:$8 sps:$4 sm:$0xff]  }
  0x19   :  { %1013 = vmatprep.subr.bf16.mxu1 %v1185_v41  ;;  %v1170_v11 = vld [vmem:[%s1576_s1 + $0x1d4] ss:$8 sps:$4 sm:$0xff]   ;;  %v1168_v12 = vld [vmem:[%s1576_s1 + $0x1d0] ss:$8 sps:$4 sm:$0xff]   ;;  %v1173_v13 = vld [vmem:[%s1576_s1 + $0x1e4] ss:$8 sps:$4 sm:$0xff]  }
  0x1a   :  { %v1171_v14 = vld [vmem:[%s1576_s1 + $0x1e0] ss:$8 sps:$4 sm:$0xff]   ;;  %v1195_v46 = vld [vmem:[%s1579_s5 + $0x10] sm:$0xff]  }
  0x1b   :  { %450 = vmatpush1.bf16.msra.mxu0 %v1101_v15  ;;  %v1176_v15 = vld [vmem:[%s1576_s1 + $0x1f4] ss:$8 sps:$4 sm:$0xff]   ;;  %v1193_v43 = vld [vmem:[%s1579_s5] sm:$0xff]  }
  0x1c   :  { %451 = vmatprep.subr.bf16.mxu0 %v1102_v16  ;;  %1014 = vmatpush3.bf16.msra.mxu1 %v1186_v44  ;;  %v1174_v16 = vld [vmem:[%s1576_s1 + $0x1f0] ss:$8 sps:$4 sm:$0xff]  }
  0x1d   :  { %1015 = vmatprep.subr.bf16.mxu1 %v1187_v47  ;;  %v1196_v47 = vld [vmem:[%s1579_s5 + $0x18] sm:$0xff]  }
  0x1f   :  { %452 = vmatpush1.bf16.msra.mxu0 %v1104_v17  ;;  %v35_v17 = vld [vmem:[%s1577_s0 + $0x10] sm:$0xff] }
  0x20   :  { %453 = vmatprep.subr.bf16.mxu0 %v1105_v18  ;;  %v39_v18 = vpack.c.bf16 %v35_v17, %v35_v17 }
  0x23   :  { %454 = vmatpush1.bf16.msra.mxu0 %v1107_v19  ;;  %v1188_v19 = vld [vmem:[%s1578_s3 + $0x28] sm:$0xff]  }
  0x24   :  { %455 = vmatprep.subr.bf16.mxu0 %v1108_v20  ;;  %1016 = vmatpush3.bf16.msra.mxu1 %v1188_v19  ;;  %v1189_v20 = vld [vmem:[%s1578_s3 + $0x70] sm:$0xff]  }
  0x25   :  { %1017 = vmatprep.subr.bf16.mxu1 %v1189_v20 }
  0x27   :  { %456 = vmatpush1.bf16.msra.mxu0 %v1110_v21  ;;  %v1190_v21 = vld [vmem:[%s1578_s3 + $0x30] sm:$0xff]  }
  0x28   :  { %457 = vmatprep.subr.bf16.mxu0 %v1111_v22  ;;  %1018 = vmatpush3.bf16.msra.mxu1 %v1190_v21  ;;  %v1191_v22 = vld [vmem:[%s1578_s3 + $0x78] sm:$0xff]  }
  0x29   :  { %1019 = vmatprep.subr.bf16.mxu1 %v1191_v22 }
  0x2b   :  { %458 = vmatpush1.bf16.msra.mxu0 %v1113_v23  ;;  %v1192_v23 = vld [vmem:[%s1578_s3 + $0x38] sm:$0xff]  }
  0x2c   :  { %459 = vmatprep.subr.bf16.mxu0 %v1114_v24  ;;  %1020 = vmatpush3.bf16.msra.mxu1 %v1192_v23  ;;  %v1205_v24 = vmov 0.0  }
  0x2d   :  { %1041 = vmatprep.subr.bf16.mxu1 %v1205_v24 }
  0x2f   :  { %460 = vmatpush1.bf16.msra.mxu0 %v1116_v25  ;;  %v107_v25 = vlaneseq }
  0x30   :  { %461 = vmatprep.subr.bf16.mxu0 %v1117_v26 }
  0x31   :  { %v108_v26 = vshrl.u32 %v107_v25, 7 }
  0x33   :  { %462 = vmatpush1.bf16.msra.mxu0 %v1119_v28  ;;  %v109_v27 = vsub.s32 0, %v108_v26  ;;  %v105_v28 = vld [vmem:[%s1580_s2] sm:$0x3]  ;;  %v113_v29 = vsub.s32 1, %v108_v26 }
  0x34   :  { %463 = vmatprep.subr.bf16.mxu0 %v1120_v30 }
  0x35   :  { %v110_v30 = vrot.slane %v105_v28, %v109_v27  ;;  %v114_v31 = vrot.slane %v105_v28, %v113_v29 }
  0x37   :  { %464 = vmatpush1.bf16.msra.mxu0 %v1122_v34 }
  0x38   :  { %465 = vmatprep.subr.bf16.mxu0 %v1123_v35 }
  0x3b   :  { %466 = vmatpush1.bf16.msra.mxu0 %v1125_v38 }
  0x3c   :  { %467 = vmatprep.subr.bf16.mxu0 %v1126_v39 }
  0x3f   :  { %468 = vmatpush1.bf16.msra.mxu0 %v1128_v42 }
  0x40   :  { %478 = vmatprep.subr.bf16.mxu0 %v1131_v45  ;;  %v1194_v45 = vld [vmem:[%s1579_s5 + $0x8] sm:$0xff]  }
  0x42   :  { %470 = vmatmul.mubr.bf16.vlgmr.msra.gmra.mrb[0].mxu0 %v37_v48  ;;  %v1197_v48 = vld [vmem:[%s1579_s5 + $0x20] sm:$0xff]  }
  0x43   :  { %479 = vmatpush1.bf16.msra.mxu0 %v1129_v49  ;;  %510 = vmatprep.mubr.bf16.mxu0 %v40_v50  ;;  %v1198_v49 = vld [vmem:[%s1579_s5 + $0x28] sm:$0xff]   ;;  %v1199_v50 = vld [vmem:[%s1579_s5 + $0x30] sm:$0xff]  }
  0x44   :  { %480 = vmatprep.subr.bf16.mxu0 %v1134_v51  ;;  %v1200_v51 = vld [vmem:[%s1579_s5 + $0x38] sm:$0xff]  }
  0x47   :  { %481 = vmatpush1.bf16.msra.mxu0 %v1132_v52 }
  0x48   :  { %482 = vmatprep.subr.bf16.mxu0 %v1137_v53  ;;  %v973_v53 = vld [vmem:[%s1582_s4] ss:$0 sm:$0xff] }
  0x4b   :  { %483 = vmatpush1.bf16.msra.mxu0 %v1135_v54 }
  0x4c   :  { %484 = vmatprep.subr.bf16.mxu0 %v1140_v55 }
  0x4f   :  { %485 = vmatpush1.bf16.msra.mxu0 %v1138_v56 }
  0x50   :  { %486 = vmatprep.subr.bf16.mxu0 %v1143_v57 }
  0x53   :  { %487 = vmatpush1.bf16.msra.mxu0 %v1141_v58 }
  0x54   :  { %488 = vmatprep.subr.bf16.mxu0 %v1146_v59 }
  0x57   :  { %489 = vmatpush1.bf16.msra.mxu0 %v1144_v60 }
  0x58   :  { %490 = vmatprep.subr.bf16.mxu0 %v1149_v61  ;;  %v1201_v61 = vld [vmem:[%s1581_s7] sm:$0xff]  }
  0x5b   :  { %491 = vmatpush1.bf16.msra.mxu0 %v1147_v62 }
  0x5c   :  { %492 = vmatprep.subr.bf16.mxu0 %v1152_v63  ;;  %v1202_v63 = vld [vmem:[%s1581_s7 + $0x8] sm:$0xff]  }
  0x5f   :  { %493 = vmatpush1.bf16.msra.mxu0 %v1150_v0  ;;  %v1203_v0 = vld [vmem:[%s1581_s7 + $0x10] sm:$0xff]  }
  0x60   :  { %494 = vmatprep.subr.bf16.mxu0 %v1155_v1  ;;  %v1204_v1 = vld [vmem:[%s1581_s7 + $0x18] sm:$0xff]  }
  0x63   :  { %495 = vmatpush1.bf16.msra.mxu0 %v1153_v2  ;;  %v990_v2 = vld [vmem:[%s1583_s6] ss:$0 sm:$0xff] }
  0x64   :  { %496 = vmatprep.subr.bf16.mxu0 %v1158_v3 }
  0x67   :  { %497 = vmatpush1.bf16.msra.mxu0 %v1156_v4 }
  0x68   :  { %498 = vmatprep.subr.bf16.mxu0 %v1161_v5 }
  0x6b   :  { %499 = vmatpush1.bf16.msra.mxu0 %v1159_v6 }
  0x6c   :  { %500 = vmatprep.subr.bf16.mxu0 %v1164_v7 }
  0x6f   :  { %501 = vmatpush1.bf16.msra.mxu0 %v1162_v8 }
  0x70   :  { %502 = vmatprep.subr.bf16.mxu0 %v1167_v9 }
  0x73   :  { %503 = vmatpush1.bf16.msra.mxu0 %v1165_v10 }
  0x74   :  { %504 = vmatprep.subr.bf16.mxu0 %v1170_v11  ;;  %v999_v11 = vld [vmem:[%s1584_s8] ss:$0 sm:$0xff] }
  0x77   :  { %505 = vmatpush1.bf16.msra.mxu0 %v1168_v12 }
  0x78   :  { %506 = vmatprep.subr.bf16.mxu0 %v1173_v13 }
  0x7b   :  { %507 = vmatpush1.bf16.msra.mxu0 %v1171_v14 }
  0x7c   :  { %508 = vmatprep.subr.bf16.mxu0 %v1176_v15 }
  0x7f   :  { %509 = vmatpush1.bf16.msra.mxu0 %v1174_v16 }
  0x82   :  { %511 = vmatmul.mubr.bf16.vlgmr.msra.gmra.mrb[0].mxu0 %v39_v18 }
 0x155   :  { %v512_v32 = vpop.f32.mrb[0].mxu0 }
 0x156   :  { %v1073_v33 = vadd.f32 %v512_v32, %v110_v30  ;;  %v514_v34 = vpop.f32.mrb[1].mxu0 }
 0x157   :  { %v1074_v35 = vadd.f32 %v514_v34, %v114_v31  ;;  %v516_v36 = vpop.f32.mrb[2].mxu0 }
 0x158   :  { %v519_v37 = vmul.f32 0.1, %v1073_v33  ;;  %v517_v38 = vpop.f32.mrb[3].mxu0 }
 0x159   :  { %v520_v39 = vmul.f32 0.1, %v1074_v35 }
 0x15a   :  { %v521_v40 = vmax.f32 %v1073_v33, %v519_v37 }
 0x15b   :  { %v522_v41 = vmax.f32 %v1074_v35, %v520_v39 }
 0x15c   :  { %v523_v44 = vpack.c.bf16 %v521_v40, %v521_v40 }
 0x15d   :  { %v524_v42 = vpack.c.bf16 %v522_v41, %v522_v41 }
 0x15f   :  { %692 = vmatprep.mubr.bf16.mxu1 %v524_v42 }
 0x160   :  { %693 = vmatmul.mubr.bf16.vlgmr.msra.gmra.mrb[0].mxu1 %v523_v44 }
 0x161   :  { %1042 = vmatpush3.bf16.msra.mxu1 %v1193_v43  ;;  %1057 = vmatprep.mubr.msk.bf16.mxu1 %vm1206_vm0, %v1205_v24 }
 0x162   :  { %1043 = vmatprep.subr.bf16.mxu1 %v1205_v24 }
 0x165   :  { %1044 = vmatpush3.bf16.msra.mxu1 %v1194_v45 }
 0x166   :  { %1045 = vmatprep.subr.bf16.mxu1 %v1205_v24 }
 0x169   :  { %1046 = vmatpush3.bf16.msra.mxu1 %v1195_v46 }
 0x16a   :  { %1047 = vmatprep.subr.bf16.mxu1 %v1205_v24 }
 0x16d   :  { %1048 = vmatpush3.bf16.msra.mxu1 %v1196_v47 }
 0x16e   :  { %1049 = vmatprep.subr.bf16.mxu1 %v1205_v24 }
 0x171   :  { %1050 = vmatpush3.bf16.msra.mxu1 %v1197_v48 }
 0x172   :  { %1051 = vmatprep.subr.bf16.mxu1 %v1205_v24 }
 0x175   :  { %1052 = vmatpush3.bf16.msra.mxu1 %v1198_v49 }
 0x176   :  { %1053 = vmatprep.subr.bf16.mxu1 %v1205_v24 }
 0x179   :  { %1054 = vmatpush3.bf16.msra.mxu1 %v1199_v50 }
 0x17a   :  { %1055 = vmatprep.subr.bf16.mxu1 %v1205_v24 }
 0x17d   :  { %1056 = vmatpush3.bf16.msra.mxu1 %v1200_v51 }
 0x17e   :  { %1061 = vmatprep.subr.bf16.mxu1 %v1205_v24 }
 0x233   :  { %v1021_v52 = vpop.f32.mrb[0].mxu1 }
 0x234   :  { %v1022_v54 = vpop.f32.mrb[1].mxu1 }
 0x235   :  { %v1023_v55 = vadd.f32 %v1022_v54, %v1021_v52  ;;  %v1024_v56 = vpop.f32.mrb[2].mxu1 }
 0x236   :  { %v1025_v57 = vpop.f32.mrb[3].mxu1 }
 0x237   :  { %v695_v58 = vadd.f32 %v1023_v55, %v973_v53 }
 0x239   :  { %v700_v59 = vmul.f32 0.1, %v695_v58 }
 0x23b   :  { %v701_v60 = vmax.f32 %v695_v58, %v700_v59 }
 0x23d   :  { %v702_v62 = vpack.c.bf16 %v701_v60, %v701_v60 }
 0x23f   :  { %1058 = vmatmul.mubr.bf16.vlgmr.msra.gmra.mrb[4].mxu1 %v702_v62 }
 0x240   :  { %1062 = vmatpush3.bf16.msra.mxu1 %v1201_v61  ;;  %1069 = vmatprep.mubr.msk.bf16.mxu1 %vm1206_vm0, %v1205_v24 }
 0x241   :  { %1063 = vmatprep.subr.bf16.mxu1 %v1205_v24 }
 0x244   :  { %1064 = vmatpush3.bf16.msra.mxu1 %v1202_v63 }
 0x245   :  { %1065 = vmatprep.subr.bf16.mxu1 %v1205_v24 }
 0x248   :  { %1066 = vmatpush3.bf16.msra.mxu1 %v1203_v0 }
 0x249   :  { %1067 = vmatprep.subr.bf16.mxu1 %v1205_v24 }
 0x24c   :  { %1068 = vmatpush3.bf16.msra.mxu1 %v1204_v1 }
 0x312   :  { %v808_v3 = vpop.f32.mrb[4].mxu1 }
 0x313   :  { %v809_v4 = vadd.f32 %v990_v2, %v808_v3  ;;  %v1059_v5 = vpop.f32.mrb[5].mxu1 }
 0x314   :  { %v811_v6 = vpop.f32.mrb[6].mxu1 }
 0x315   :  { %v814_v7 = vmul.f32 0.1, %v809_v4  ;;  %v1060_v8 = vpop.f32.mrb[7].mxu1 }
 0x317   :  { %v815_v9 = vmax.f32 %v809_v4, %v814_v7 }
 0x319   :  { %v816_v10 = vpack.c.bf16 %v815_v9, %v815_v9 }
 0x31b   :  { %1070 = vmatmul.mubr.msk.bf16.vlgmr.msra.gmra.mrb[8].mxu1 %vm856_vm1, %v816_v10 }
 0x3ee   :  { %v894_v12 = vpop.f32.mrb[8].mxu1 }
 0x3ef   :  { %v895_v13 = vadd.f32 %v999_v11, %v894_v12  ;;  %v1071_v14 = vpop.f32.mrb[9].mxu1 }
 0x3f0   :  { %v897_v15 = vpop.f32.mrb[10].mxu1 }
 0x3f1   :  { %v900_v16 = vmul.f32 0.1, %v895_v13  ;;  %v1072_v17 = vpop.f32.mrb[11].mxu1 }
 0x3f3   :  { %v901_v18 = vmax.f32 %v895_v13, %v900_v16 }
 0x3f5   :  { %v902_v19 = vpack.c.bf16 %v901_v18, %v901_v18 }
 0x3f7   :  { %904 = vst.msk [vmem:[%s1585_s9] sm:$0xf] %vm903_vm2, %v902_v19 }

</bundles_post_ra>
